<compile_context>
chip_gen: v7x
topology: tpu7x:2x2x1
jax: 0.10.0
libtpu: 0.0.40
codegen_flags: <defaults>
</compile_context>

<pallas_src>
import math

import jax
import jax.numpy as jnp
import numpy as np
from jax.experimental import pallas as pl
from jax.experimental.pallas import tpu as pltpu

LANE = 128
SUBLANE = 8


def _round_up(n, m):
    return ((n + m - 1) // m) * m


def _cdiv(a, b):
    return -(-a // b)


def _vmem_budget_bytes():
    """~80% of this generation's physical VMEM (conservative fallback)."""
    try:
        cap = int(pltpu.get_tpu_info().vmem_capacity_bytes)
    except Exception:
        cap = 64 << 20
    return int(0.8 * cap)


def _make_kernel(num_layers: int):
    """refs = (x, w0, b0, w1, b1, ..., w_{L-1}, b_{L-1}, out).

    Weights arrive pre-transposed / zero-padded / muP-scaled as [in, out_pad]
    (f32 or bf16); biases arrive pre-muP-scaled as f32 [1, out_pad].
    """

    def kernel(x_ref, *refs):
        o_ref = refs[-1]
        wb = refs[:-1]

        x = x_ref[...].astype(jnp.float32)
        for i in range(num_layers):
            w = wb[2 * i][...]          # [in_pad, out_pad]
            b = wb[2 * i + 1][...]      # [1, out_pad], f32

            prev = x
            # Cast to the weight dtype only at the MXU input; accumulation and
            # the elementwise chain (bias/ReLU/residual) stay in f32.
            x = jnp.dot(x.astype(w.dtype), w,
                        preferred_element_type=jnp.float32) + b
            if i < num_layers - 1:
                x = jnp.maximum(x, 0.0)     # ReLU
                if i > 0:
                    x = x + prev            # residual add (skip layer 0)

        o_ref[...] = x.astype(o_ref.dtype)

    return kernel


def prepare_params(weights, biases, width, *, param_dtype=jnp.bfloat16):
    """One-time param prep (off the hot path).

    weights[i]: torch Linear layout [out, in]; biases[i]: [out].
    Weights are transposed to [in, out], zero-padded on hidden/output dims to
    lane multiples, muP weight scales folded in, then cast to param_dtype.
    Layer-0's input dim stays UN-padded so x needs no lane padding.
    Biases get their muP scale baked in (kept f32).
    """
    num_layers = len(weights)
    dims = [int(weights[0].shape[1])] + [int(w.shape[0]) for w in weights]
    pdims = [dims[0]] + [max(LANE, _round_up(d, LANE)) for d in dims[1:]]
    s = float(width) ** 0.5

    flat = []
    for i, (w, b) in enumerate(zip(weights, biases)):
        d_in, d_out = dims[i], dims[i + 1]
        p_in, p_out = pdims[i], pdims[i + 1]

        if i == 0:                      # awi = -0.5, abi = -0.5
            w_scale, b_scale = s, s
        elif i == num_layers - 1:       # awi = 0.5,  abi = 0
            w_scale, b_scale = 1.0 / s, 1.0
        else:                           # awi = 0,    abi = -0.5
            w_scale, b_scale = 1.0, s

        wt = jnp.zeros((p_in, p_out), param_dtype)
        wt = wt.at[:d_in, :d_out].set(
            (w_scale * jnp.asarray(w, jnp.float32)).T.astype(param_dtype))

        b2 = jnp.zeros((1, p_out), jnp.float32)
        b2 = b2.at[0, :d_out].set(jnp.asarray(b, jnp.float32) * b_scale)

        flat += [wt, b2]
    return flat, dims, pdims


def _pick_batch_tile(B, d_in, pdims, param_bytes, vmem_budget):
    """Balanced batch tiles: big enough to feed the MXU, small enough for VMEM,
    and >= 2 grid steps so v7x's two TensorCores both get work."""
    p_out, p_max = pdims[-1], max(pdims)
    # Rough f32 bytes in flight per batch row: double-buffered x & out DMA
    # slabs plus a few live activation temporaries inside the kernel.
    per_row = 4 * (2 * d_in + 2 * p_out + 3 * p_max)
    avail = max(vmem_budget - 2 * param_bytes, 1 << 20)
    cap = min(1024, max(SUBLANE, (avail // per_row) // SUBLANE * SUBLANE))
    n_tiles = max(1, _cdiv(B, cap))
    if B > SUBLANE and n_tiles < 2:
        n_tiles = 2
    return _round_up(_cdiv(B, n_tiles), SUBLANE)


def relu_resnet_mup_forward(x, flat_params, dims, pdims, *,
                            batch_tile=None, interpret=False):
    """Fused forward. x: [B, input_length] f32. Returns [B, output_width]."""
    num_layers = len(flat_params) // 2
    B, d_in = x.shape
    assert d_in == dims[0]
    p_out, d_out = pdims[-1], dims[-1]

    param_bytes = sum(int(a.size) * a.dtype.itemsize for a in flat_params)
    vmem_budget = _vmem_budget_bytes()
    if batch_tile is None:
        batch_tile = _pick_batch_tile(B, d_in, pdims, param_bytes, vmem_budget)
    B_pad = _round_up(B, batch_tile)

    # Only the batch dim is padded (padded rows produce garbage rows that are
    # sliced off); feature lanes of x stay at their logical width.
    x_p = x if B_pad == B else jnp.zeros((B_pad, d_in), x.dtype).at[:B].set(x)

    flops = 2 * B_pad * sum(pdims[i] * pdims[i + 1] for i in range(num_layers))
    bytes_accessed = (x_p.size * x_p.dtype.itemsize + param_bytes
                      + B_pad * p_out * 4)

    def run(single_buffer_params):
        pkw = {"pipeline_mode": pl.Buffered(1)} if single_buffer_params else {}
        in_specs = [pl.BlockSpec((batch_tile, d_in), lambda i: (i, 0))]
        for a in flat_params:
            # Constant block index -> fetched once; single-buffer to halve
            # resident parameter VMEM.
            in_specs.append(pl.BlockSpec(a.shape, lambda i: (0, 0), **pkw))

        out = pl.pallas_call(
            _make_kernel(num_layers),
            out_shape=jax.ShapeDtypeStruct((B_pad, p_out), jnp.float32),
            grid=(B_pad // batch_tile,),
            in_specs=in_specs,
            out_specs=pl.BlockSpec((batch_tile, p_out), lambda i: (i, 0)),
            compiler_params=pltpu.CompilerParams(
                dimension_semantics=("parallel",),
                vmem_limit_bytes=vmem_budget),
            cost_estimate=pl.CostEstimate(flops=flops, transcendentals=0,
                                          bytes_accessed=bytes_accessed),
            interpret=interpret,
        )(x_p, *flat_params)
        return jax.block_until_ready(out)

    try:
        out = run(True)
    except Exception:
        # Fallback if pipeline_mode=pl.Buffered(1) isn't honored on this JAX.
        out = run(False)
    return out[:B, :d_out]


def reference_forward(x, weights, biases, width):
    """Pure-JAX replica of the PyTorch forward (verification only)."""
    num_layers = len(weights)
    h = x
    for i in range(num_layers):
        if i == 0:
            sw, sb = width ** 0.5, width ** 0.5
        elif i == num_layers - 1:
            sw, sb = width ** -0.5, 1.0
        else:
            sw, sb = 1.0, width ** 0.5
        prev = h
        h = h @ (sw * weights[i]).T + sb * biases[i]
        if i < num_layers - 1:
            h = jnp.maximum(h, 0.0)
            if i > 0:
                h = h + prev
    return h


def init_params(key, input_length, num_layers, width,
                weight_std=0.5, bias_std=0.5):
    """Mirror ReLUResNetMUP_manual.__init__ init (torch layout [out, in])."""
    layer_dims = [input_length] + [width] * (num_layers - 1) + [1]
    weights, biases = [], []
    for i in range(num_layers):
        key, kw, kb = jax.random.split(key, 3)
        fan_in, fan_out = layer_dims[i], layer_dims[i + 1]
        bwi = 0.5
        bbi = 0.0 if i == num_layers - 1 else 0.5
        w_std = weight_std * math.pow(width, -bwi)
        if i == 0:
            w_std = w_std * math.pow(input_length, -0.5)
        b_std = bias_std * math.pow(width, -bbi)
        weights.append(w_std * jax.random.normal(kw, (fan_out, fan_in),
                                                 jnp.float32))
        biases.append(b_std * jax.random.normal(kb, (fan_out,), jnp.float32))
    return weights, biases


if __name__ == "__main__":
    input_length = 16
    num_layers = 4
    width = 32
    batch = 16

    key = jax.random.PRNGKey(0)
    key, kx = jax.random.split(key)
    x = jax.random.normal(kx, (batch, input_length), jnp.float32)
    weights, biases = init_params(key, input_length, num_layers, width)
    ref = reference_forward(x, weights, biases, width)

    # f32-param path: tight check that the fused kernel math is exact.
    flat32, dims, pdims = prepare_params(weights, biases, width,
                                         param_dtype=jnp.float32)
    out32 = relu_resnet_mup_forward(x, flat32, dims, pdims)
    out32 = jax.block_until_ready(out32)
    np.testing.assert_allclose(np.asarray(out32), np.asarray(ref),
                               rtol=1e-5, atol=1e-5)

    # bf16-param default fast path: looser tolerance for the reduced precision.
    flat16, dims, pdims = prepare_params(weights, biases, width)
    out16 = relu_resnet_mup_forward(x, flat16, dims, pdims)
    out16 = jax.block_until_ready(out16)
    np.testing.assert_allclose(np.asarray(out16), np.asarray(ref),
                               rtol=5e-2, atol=5e-2)

    assert out16.shape == (batch, 1)
    print("KERNEL_OK")
</pallas_src>

<mosaic_0001>
module attributes {stable_mosaic.version = 11 : i64} {
  func.func @kernel(%arg0: i32, %arg1: memref<8x16xf32, #tpu.memory_space<vmem>>, %arg2: memref<16x128xf32, #tpu.memory_space<vmem>>, %arg3: memref<1x128xf32, #tpu.memory_space<vmem>>, %arg4: memref<128x128xf32, #tpu.memory_space<vmem>>, %arg5: memref<1x128xf32, #tpu.memory_space<vmem>>, %arg6: memref<128x128xf32, #tpu.memory_space<vmem>>, %arg7: memref<1x128xf32, #tpu.memory_space<vmem>>, %arg8: memref<128x128xf32, #tpu.memory_space<vmem>>, %arg9: memref<1x128xf32, #tpu.memory_space<vmem>>, %arg10: memref<8x128xf32, #tpu.memory_space<vmem>>) attributes {dimension_semantics = [#tpu.dimension_semantics<parallel>], iteration_bounds = array<i64: 2>, scalar_prefetch = 0 : i64, scratch_operands = 0 : i64, tpu.core_type = #tpu.core_type<tc>, window_params = [{transform_indices = @transform_0, window_bounds = array<i64: 8, 16>}, {pipeline_mode = #tpu.pipeline_mode<synchronous>, transform_indices = @transform_1, window_bounds = array<i64: 16, 128>}, {pipeline_mode = #tpu.pipeline_mode<synchronous>, transform_indices = @transform_2, window_bounds = array<i64: 1, 128>}, {pipeline_mode = #tpu.pipeline_mode<synchronous>, transform_indices = @transform_3, window_bounds = array<i64: 128, 128>}, {pipeline_mode = #tpu.pipeline_mode<synchronous>, transform_indices = @transform_4, window_bounds = array<i64: 1, 128>}, {pipeline_mode = #tpu.pipeline_mode<synchronous>, transform_indices = @transform_5, window_bounds = array<i64: 128, 128>}, {pipeline_mode = #tpu.pipeline_mode<synchronous>, transform_indices = @transform_6, window_bounds = array<i64: 1, 128>}, {pipeline_mode = #tpu.pipeline_mode<synchronous>, transform_indices = @transform_7, window_bounds = array<i64: 128, 128>}, {pipeline_mode = #tpu.pipeline_mode<synchronous>, transform_indices = @transform_8, window_bounds = array<i64: 1, 128>}, {transform_indices = @transform_9, window_bounds = array<i64: 8, 128>}]} {
    %c0 = arith.constant 0 : index
    %c0_0 = arith.constant 0 : index
    %0 = vector.load %arg1[%c0, %c0_0] : memref<8x16xf32, #tpu.memory_space<vmem>>, vector<8x16xf32>
    %c0_1 = arith.constant 0 : index
    %c0_2 = arith.constant 0 : index
    %1 = vector.load %arg2[%c0_1, %c0_2] : memref<16x128xf32, #tpu.memory_space<vmem>>, vector<16x128xf32>
    %c0_3 = arith.constant 0 : index
    %c0_4 = arith.constant 0 : index
    %2 = vector.load %arg3[%c0_3, %c0_4] : memref<1x128xf32, #tpu.memory_space<vmem>>, vector<1x128xf32>
    %cst = arith.constant dense<0.000000e+00> : vector<8x128xf32>
    %3 = tpu.matmul %0, %1, %cst {dimension_numbers = #tpu.dot_dimension_numbers<[1], [0], [0], [1], [0, 0, 1, 1], [], []>} : vector<8x16xf32>, vector<16x128xf32>, vector<8x128xf32> -> vector<8x128xf32>
    %4 = vector.broadcast %2 : vector<1x128xf32> to vector<8x128xf32>
    %5 = arith.addf %3, %4 : vector<8x128xf32>
    %cst_5 = arith.constant 0.000000e+00 : f32
    %6 = vector.broadcast %cst_5 : f32 to vector<8x128xf32>
    %7 = arith.maximumf %5, %6 : vector<8x128xf32>
    %c0_6 = arith.constant 0 : index
    %c0_7 = arith.constant 0 : index
    %8 = vector.load %arg4[%c0_6, %c0_7] : memref<128x128xf32, #tpu.memory_space<vmem>>, vector<128x128xf32>
    %c0_8 = arith.constant 0 : index
    %c0_9 = arith.constant 0 : index
    %9 = vector.load %arg5[%c0_8, %c0_9] : memref<1x128xf32, #tpu.memory_space<vmem>>, vector<1x128xf32>
    %cst_10 = arith.constant dense<0.000000e+00> : vector<8x128xf32>
    %10 = tpu.matmul %7, %8, %cst_10 {dimension_numbers = #tpu.dot_dimension_numbers<[1], [0], [0], [1], [0, 0, 1, 1], [], []>} : vector<8x128xf32>, vector<128x128xf32>, vector<8x128xf32> -> vector<8x128xf32>
    %11 = vector.broadcast %9 : vector<1x128xf32> to vector<8x128xf32>
    %12 = arith.addf %10, %11 : vector<8x128xf32>
    %cst_11 = arith.constant 0.000000e+00 : f32
    %13 = vector.broadcast %cst_11 : f32 to vector<8x128xf32>
    %14 = arith.maximumf %12, %13 : vector<8x128xf32>
    %15 = arith.addf %14, %7 : vector<8x128xf32>
    %c0_12 = arith.constant 0 : index
    %c0_13 = arith.constant 0 : index
    %16 = vector.load %arg6[%c0_12, %c0_13] : memref<128x128xf32, #tpu.memory_space<vmem>>, vector<128x128xf32>
    %c0_14 = arith.constant 0 : index
    %c0_15 = arith.constant 0 : index
    %17 = vector.load %arg7[%c0_14, %c0_15] : memref<1x128xf32, #tpu.memory_space<vmem>>, vector<1x128xf32>
    %cst_16 = arith.constant dense<0.000000e+00> : vector<8x128xf32>
    %18 = tpu.matmul %15, %16, %cst_16 {dimension_numbers = #tpu.dot_dimension_numbers<[1], [0], [0], [1], [0, 0, 1, 1], [], []>} : vector<8x128xf32>, vector<128x128xf32>, vector<8x128xf32> -> vector<8x128xf32>
    %19 = vector.broadcast %17 : vector<1x128xf32> to vector<8x128xf32>
    %20 = arith.addf %18, %19 : vector<8x128xf32>
    %cst_17 = arith.constant 0.000000e+00 : f32
    %21 = vector.broadcast %cst_17 : f32 to vector<8x128xf32>
    %22 = arith.maximumf %20, %21 : vector<8x128xf32>
    %23 = arith.addf %22, %15 : vector<8x128xf32>
    %c0_18 = arith.constant 0 : index
    %c0_19 = arith.constant 0 : index
    %24 = vector.load %arg8[%c0_18, %c0_19] : memref<128x128xf32, #tpu.memory_space<vmem>>, vector<128x128xf32>
    %c0_20 = arith.constant 0 : index
    %c0_21 = arith.constant 0 : index
    %25 = vector.load %arg9[%c0_20, %c0_21] : memref<1x128xf32, #tpu.memory_space<vmem>>, vector<1x128xf32>
    %cst_22 = arith.constant dense<0.000000e+00> : vector<8x128xf32>
    %26 = tpu.matmul %23, %24, %cst_22 {dimension_numbers = #tpu.dot_dimension_numbers<[1], [0], [0], [1], [0, 0, 1, 1], [], []>} : vector<8x128xf32>, vector<128x128xf32>, vector<8x128xf32> -> vector<8x128xf32>
    %27 = vector.broadcast %25 : vector<1x128xf32> to vector<8x128xf32>
    %28 = arith.addf %26, %27 : vector<8x128xf32>
    %c0_23 = arith.constant 0 : index
    %c0_24 = arith.constant 0 : index
    %29 = vector.load %arg10[%c0_23, %c0_24] : memref<8x128xf32, #tpu.memory_space<vmem>>, vector<8x128xf32>
    tpu.vector_store %arg10[%c0_23, %c0_24], %28 {strides = array<i32>} : memref<8x128xf32, #tpu.memory_space<vmem>>, vector<8x128xf32>,
    return
  }
  func.func @transform_0(%arg0: i32) -> (i32, i32) {
    %c0_i32 = arith.constant 0 : i32
    %c0_i32_0 = arith.constant 0 : i32
    return %arg0, %c0_i32 : i32, i32
  }
  func.func @transform_1(%arg0: i32) -> (i32, i32) {
    %c0_i32 = arith.constant 0 : i32
    %c0_i32_0 = arith.constant 0 : i32
    %c0_i32_1 = arith.constant 0 : i32
    return %c0_i32, %c0_i32_0 : i32, i32
  }
  func.func @transform_2(%arg0: i32) -> (i32, i32) {
    %c0_i32 = arith.constant 0 : i32
    %c0_i32_0 = arith.constant 0 : i32
    %c0_i32_1 = arith.constant 0 : i32
    return %c0_i32, %c0_i32_0 : i32, i32
  }
  func.func @transform_3(%arg0: i32) -> (i32, i32) {
    %c0_i32 = arith.constant 0 : i32
    %c0_i32_0 = arith.constant 0 : i32
    %c0_i32_1 = arith.constant 0 : i32
    return %c0_i32, %c0_i32_0 : i32, i32
  }
  func.func @transform_4(%arg0: i32) -> (i32, i32) {
    %c0_i32 = arith.constant 0 : i32
    %c0_i32_0 = arith.constant 0 : i32
    %c0_i32_1 = arith.constant 0 : i32
    return %c0_i32, %c0_i32_0 : i32, i32
  }
  func.func @transform_5(%arg0: i32) -> (i32, i32) {
    %c0_i32 = arith.constant 0 : i32
    %c0_i32_0 = arith.constant 0 : i32
    %c0_i32_1 = arith.constant 0 : i32
    return %c0_i32, %c0_i32_0 : i32, i32
  }
  func.func @transform_6(%arg0: i32) -> (i32, i32) {
    %c0_i32 = arith.constant 0 : i32
    %c0_i32_0 = arith.constant 0 : i32
    %c0_i32_1 = arith.constant 0 : i32
    return %c0_i32, %c0_i32_0 : i32, i32
  }
  func.func @transform_7(%arg0: i32) -> (i32, i32) {
    %c0_i32 = arith.constant 0 : i32
    %c0_i32_0 = arith.constant 0 : i32
    %c0_i32_1 = arith.constant 0 : i32
    return %c0_i32, %c0_i32_0 : i32, i32
  }
  func.func @transform_8(%arg0: i32) -> (i32, i32) {
    %c0_i32 = arith.constant 0 : i32
    %c0_i32_0 = arith.constant 0 : i32
    %c0_i32_1 = arith.constant 0 : i32
    return %c0_i32, %c0_i32_0 : i32, i32
  }
  func.func @transform_9(%arg0: i32) -> (i32, i32) {
    %c0_i32 = arith.constant 0 : i32
    %c0_i32_0 = arith.constant 0 : i32
    return %arg0, %c0_i32 : i32, i32
  }
}

module attributes {stable_mosaic.version = 11 : i64} {
  func.func @kernel(%arg0: i32, %arg1: memref<8x16xf32, #tpu.memory_space<vmem>>, %arg2: memref<16x128xf32, #tpu.memory_space<vmem>>, %arg3: memref<1x128xf32, #tpu.memory_space<vmem>>, %arg4: memref<128x128xf32, #tpu.memory_space<vmem>>, %arg5: memref<1x128xf32, #tpu.memory_space<vmem>>, %arg6: memref<128x128xf32, #tpu.memory_space<vmem>>, %arg7: memref<1x128xf32, #tpu.memory_space<vmem>>, %arg8: memref<128x128xf32, #tpu.memory_space<vmem>>, %arg9: memref<1x128xf32, #tpu.memory_space<vmem>>, %arg10: memref<8x128xf32, #tpu.memory_space<vmem>>) attributes {dimension_semantics = [#tpu.dimension_semantics<parallel>], iteration_bounds = array<i64: 2>, scalar_prefetch = 0 : i64, scratch_operands = 0 : i64, tpu.core_type = #tpu.core_type<tc>, window_params = [{transform_indices = @transform_0, window_bounds = array<i64: 8, 16>}, {pipeline_mode = #tpu.pipeline_mode<synchronous>, transform_indices = @transform_1, window_bounds = array<i64: 16, 128>}, {pipeline_mode = #tpu.pipeline_mode<synchronous>, transform_indices = @transform_2, window_bounds = array<i64: 1, 128>}, {pipeline_mode = #tpu.pipeline_mode<synchronous>, transform_indices = @transform_3, window_bounds = array<i64: 128, 128>}, {pipeline_mode = #tpu.pipeline_mode<synchronous>, transform_indices = @transform_4, window_bounds = array<i64: 1, 128>}, {pipeline_mode = #tpu.pipeline_mode<synchronous>, transform_indices = @transform_5, window_bounds = array<i64: 128, 128>}, {pipeline_mode = #tpu.pipeline_mode<synchronous>, transform_indices = @transform_6, window_bounds = array<i64: 1, 128>}, {pipeline_mode = #tpu.pipeline_mode<synchronous>, transform_indices = @transform_7, window_bounds = array<i64: 128, 128>}, {pipeline_mode = #tpu.pipeline_mode<synchronous>, transform_indices = @transform_8, window_bounds = array<i64: 1, 128>}, {transform_indices = @transform_9, window_bounds = array<i64: 8, 128>}]} {
    %c0 = arith.constant 0 : index
    %c0_0 = arith.constant 0 : index
    %0 = vector.load %arg1[%c0, %c0_0] : memref<8x16xf32, #tpu.memory_space<vmem>>, vector<8x16xf32>
    %c0_1 = arith.constant 0 : index
    %c0_2 = arith.constant 0 : index
    %1 = vector.load %arg2[%c0_1, %c0_2] : memref<16x128xf32, #tpu.memory_space<vmem>>, vector<16x128xf32>
    %c0_3 = arith.constant 0 : index
    %c0_4 = arith.constant 0 : index
    %2 = vector.load %arg3[%c0_3, %c0_4] : memref<1x128xf32, #tpu.memory_space<vmem>>, vector<1x128xf32>
    %cst = arith.constant dense<0.000000e+00> : vector<8x128xf32>
    %3 = tpu.matmul %0, %1, %cst {dimension_numbers = #tpu.dot_dimension_numbers<[1], [0], [0], [1], [0, 0, 1, 1], [], []>} : vector<8x16xf32>, vector<16x128xf32>, vector<8x128xf32> -> vector<8x128xf32>
    %4 = vector.broadcast %2 : vector<1x128xf32> to vector<8x128xf32>
    %5 = arith.addf %3, %4 : vector<8x128xf32>
    %cst_5 = arith.constant 0.000000e+00 : f32
    %6 = vector.broadcast %cst_5 : f32 to vector<8x128xf32>
    %7 = arith.maximumf %5, %6 : vector<8x128xf32>
    %c0_6 = arith.constant 0 : index
    %c0_7 = arith.constant 0 : index
    %8 = vector.load %arg4[%c0_6, %c0_7] : memref<128x128xf32, #tpu.memory_space<vmem>>, vector<128x128xf32>
    %c0_8 = arith.constant 0 : index
    %c0_9 = arith.constant 0 : index
    %9 = vector.load %arg5[%c0_8, %c0_9] : memref<1x128xf32, #tpu.memory_space<vmem>>, vector<1x128xf32>
    %cst_10 = arith.constant dense<0.000000e+00> : vector<8x128xf32>
    %10 = tpu.matmul %7, %8, %cst_10 {dimension_numbers = #tpu.dot_dimension_numbers<[1], [0], [0], [1], [0, 0, 1, 1], [], []>} : vector<8x128xf32>, vector<128x128xf32>, vector<8x128xf32> -> vector<8x128xf32>
    %11 = vector.broadcast %9 : vector<1x128xf32> to vector<8x128xf32>
    %12 = arith.addf %10, %11 : vector<8x128xf32>
    %cst_11 = arith.constant 0.000000e+00 : f32
    %13 = vector.broadcast %cst_11 : f32 to vector<8x128xf32>
    %14 = arith.maximumf %12, %13 : vector<8x128xf32>
    %15 = arith.addf %14, %7 : vector<8x128xf32>
    %c0_12 = arith.constant 0 : index
    %c0_13 = arith.constant 0 : index
    %16 = vector.load %arg6[%c0_12, %c0_13] : memref<128x128xf32, #tpu.memory_space<vmem>>, vector<128x128xf32>
    %c0_14 = arith.constant 0 : index
    %c0_15 = arith.constant 0 : index
    %17 = vector.load %arg7[%c0_14, %c0_15] : memref<1x128xf32, #tpu.memory_space<vmem>>, vector<1x128xf32>
    %cst_16 = arith.constant dense<0.000000e+00> : vector<8x128xf32>
    %18 = tpu.matmul %15, %16, %cst_16 {dimension_numbers = #tpu.dot_dimension_numbers<[1], [0], [0], [1], [0, 0, 1, 1], [], []>} : vector<8x128xf32>, vector<128x128xf32>, vector<8x128xf32> -> vector<8x128xf32>
    %19 = vector.broadcast %17 : vector<1x128xf32> to vector<8x128xf32>
    %20 = arith.addf %18, %19 : vector<8x128xf32>
    %cst_17 = arith.constant 0.000000e+00 : f32
    %21 = vector.broadcast %cst_17 : f32 to vector<8x128xf32>
    %22 = arith.maximumf %20, %21 : vector<8x128xf32>
    %23 = arith.addf %22, %15 : vector<8x128xf32>
    %c0_18 = arith.constant 0 : index
    %c0_19 = arith.constant 0 : index
    %24 = vector.load %arg8[%c0_18, %c0_19] : memref<128x128xf32, #tpu.memory_space<vmem>>, vector<128x128xf32>
    %c0_20 = arith.constant 0 : index
    %c0_21 = arith.constant 0 : index
    %25 = vector.load %arg9[%c0_20, %c0_21] : memref<1x128xf32, #tpu.memory_space<vmem>>, vector<1x128xf32>
    %cst_22 = arith.constant dense<0.000000e+00> : vector<8x128xf32>
    %26 = tpu.matmul %23, %24, %cst_22 {dimension_numbers = #tpu.dot_dimension_numbers<[1], [0], [0], [1], [0, 0, 1, 1], [], []>} : vector<8x128xf32>, vector<128x128xf32>, vector<8x128xf32> -> vector<8x128xf32>
    %27 = vector.broadcast %25 : vector<1x128xf32> to vector<8x128xf32>
    %28 = arith.addf %26, %27 : vector<8x128xf32>
    %c0_23 = arith.constant 0 : index
    %c0_24 = arith.constant 0 : index
    %29 = vector.load %arg10[%c0_23, %c0_24] : memref<8x128xf32, #tpu.memory_space<vmem>>, vector<8x128xf32>
    tpu.vector_store %arg10[%c0_23, %c0_24], %28 {strides = array<i32>} : memref<8x128xf32, #tpu.memory_space<vmem>>, vector<8x128xf32>,
    return
  }
  func.func @transform_0(%arg0: i32) -> (i32, i32) {
    %c0_i32 = arith.constant 0 : i32
    %c0_i32_0 = arith.constant 0 : i32
    return %arg0, %c0_i32 : i32, i32
  }
  func.func @transform_1(%arg0: i32) -> (i32, i32) {
    %c0_i32 = arith.constant 0 : i32
    %c0_i32_0 = arith.constant 0 : i32
    %c0_i32_1 = arith.constant 0 : i32
    return %c0_i32, %c0_i32_0 : i32, i32
  }
  func.func @transform_2(%arg0: i32) -> (i32, i32) {
    %c0_i32 = arith.constant 0 : i32
    %c0_i32_0 = arith.constant 0 : i32
    %c0_i32_1 = arith.constant 0 : i32
    return %c0_i32, %c0_i32_0 : i32, i32
  }
  func.func @transform_3(%arg0: i32) -> (i32, i32) {
    %c0_i32 = arith.constant 0 : i32
    %c0_i32_0 = arith.constant 0 : i32
    %c0_i32_1 = arith.constant 0 : i32
    return %c0_i32, %c0_i32_0 : i32, i32
  }
  func.func @transform_4(%arg0: i32) -> (i32, i32) {
    %c0_i32 = arith.constant 0 : i32
    %c0_i32_0 = arith.constant 0 : i32
    %c0_i32_1 = arith.constant 0 : i32
    return %c0_i32, %c0_i32_0 : i32, i32
  }
  func.func @transform_5(%arg0: i32) -> (i32, i32) {
    %c0_i32 = arith.constant 0 : i32
    %c0_i32_0 = arith.constant 0 : i32
    %c0_i32_1 = arith.constant 0 : i32
    return %c0_i32, %c0_i32_0 : i32, i32
  }
  func.func @transform_6(%arg0: i32) -> (i32, i32) {
    %c0_i32 = arith.constant 0 : i32
    %c0_i32_0 = arith.constant 0 : i32
    %c0_i32_1 = arith.constant 0 : i32
    return %c0_i32, %c0_i32_0 : i32, i32
  }
  func.func @transform_7(%arg0: i32) -> (i32, i32) {
    %c0_i32 = arith.constant 0 : i32
    %c0_i32_0 = arith.constant 0 : i32
    %c0_i32_1 = arith.constant 0 : i32
    return %c0_i32, %c0_i32_0 : i32, i32
  }
  func.func @transform_8(%arg0: i32) -> (i32, i32) {
    %c0_i32 = arith.constant 0 : i32
    %c0_i32_0 = arith.constant 0 : i32
    %c0_i32_1 = arith.constant 0 : i32
    return %c0_i32, %c0_i32_0 : i32, i32
  }
  func.func @transform_9(%arg0: i32) -> (i32, i32) {
    %c0_i32 = arith.constant 0 : i32
    %c0_i32_0 = arith.constant 0 : i32
    return %arg0, %c0_i32 : i32, i32
  }
}

</mosaic_0001>

<bundles_post_ra>
// kernel: tpu_custom_call.1
= control target key start
LH: loop header
LB: loop body
LE: loop exit
PB: predicated region body
PF: predicated region fallthrough
CT: control target
= control target key end

     0   :  { %s1875_s0 = inlined_call_operand.hbm [shape: f32[16,16], index: 0, kind: input, shape index: {}]   ;;  %s1876_s1 = inlined_call_operand.hbm [shape: f32[16,128], index: 1, kind: input, shape index: {}]   ;;  %s1877_s2 = inlined_call_operand.vmem [shape: f32[1,128], index: 2, kind: input, shape index: {}]   ;;  %s1878_s3 = inlined_call_operand.hbm [shape: f32[128,128], index: 3, kind: input, shape index: {}]   ;;  %s1879_s4 = inlined_call_operand.vmem [shape: f32[1,128], index: 4, kind: input, shape index: {}]   ;;  %s1880_s5 = inlined_call_operand.hbm [shape: f32[128,128], index: 5, kind: input, shape index: {}]   ;;  %s1881_s6 = inlined_call_operand.vmem [shape: f32[1,128], index: 6, kind: input, shape index: {}]   ;;  %s1882_s7 = inlined_call_operand.hbm [shape: f32[128,128], index: 7, kind: input, shape index: {}]   ;;  %s1883_s8 = inlined_call_operand.vmem [shape: f32[1,128], index: 8, kind: input, shape index: {}]   ;;  %s1884_s9 = inlined_call_operand.hbm [shape: f32[16,128], index: 9, kind: output, shape index: {}]  }
   0x1   :  { %1889 = sst [smem:[#allocation16_spill]] %s1876_s1 }
   0x2   :  { %1890 = sst [smem:[#allocation17_spill]] %s1884_s9 }
   0x3   :  { %14 = vsyncpa [#allocation3], 0 }
   0x4   :  { %16 = vsyncpa [#allocation3 + $0x1], 0 }
   0x5   :  { %17 = vsyncpa [#allocation6], 0 }
   0x6   :  { %18 = vsyncpa [#allocation9], 0 }
   0x7   :  { %19 = vsyncpa [#allocation4], 0 }
   0x8   :  { %21 = vsyncpa [#allocation4 + $0x1], 0  ;;  %s1534_s30 = smov 0   ;;  %s1536_s10 = smov 0  }
   0x9   :  { %s1538_s11 = smov 0   ;;  %s1540_s12 = smov 0  }
   0xa LB: > { %s1473_s13 = smov [#allocation5]   ;;  %s1555_s15 = sadd.s32 4294967295, %s1471_s12   ;;  %s1471_s12 = sphi %s1540_s12, %s1913_s12   ;;  %s1467_s11 = sphi %s1538_s11, %s1912_s11   ;;  %s1463_s10 = sphi %s1536_s10, %s1911_s10   ;;  %s1459_s30 = sphi %s1534_s30, %s1910_s30  }
   0xb   : > { %s264_s14 = sshll.u32 %s1473_s13, 4  ;;  %p898_p0 = scmp.ge.s32.totalorder %s1471_s12, 1  ;;  %s1560_s14 = int_to_ptr.vmem [resolvable:$true] %s264_s14 }
   0xc   : > { %p1886_p1 = scmp.eq.s32.totalorder %s1555_s15, 0  ;;  %p252_p2 = scmp.lt.s32.totalorder %s1471_s12, 3 }
   0xd   : > { %s1474_s17 = smov [#allocation8]   ;;  %s1475_s20 = smov [#allocation7]  }
   0xe   : > { %p1562_p3 = pnand %p898_p0, %p252_p2  ;;  %s296_s18 = sshll.u32 %s1474_s17, 4  ;;  %s1575_s18 = int_to_ptr.vmem [resolvable:$true] %s296_s18 }
   0xf   : > { %s280_s21 = sshll.u32 %s1475_s20, 4  ;;  %s1893_s1 = sld [smem:[#allocation16_spill]]  ;;  %s1577_s21 = int_to_ptr.vmem [resolvable:$true] %s280_s21 }
  0x10   : > { %s1891_s16 = scalar_select %p1562_p3, 1, 0 }
  0x11   : > { %p1183_p5 = pneg %p1562_p3 }
  0x13   : > { %p1571_p6 = pnand %p1183_p5, %p1886_p1 }
  0x15   : > { %s1255_s24 = scalar_lea.hbm %s1893_s1, 256  ;;  %p1587_p8 = pneg %p1571_p6 }
  0x16   : > { %p1256_p7 = scmp.ne.s32.totalorder %s1893_s1, %s1255_s24  ;;  %p1262_p11 = scmp.lt.u32.totalorder %s1255_s24, %s1893_s1 }
  0x18   : > { %p1258_p9 = pnand %p1587_p8, %p1256_p7 }
  0x1a   : > { %p1259_p10 = pneg %p1258_p9 }
  0x1c   : > { %p1264_p12 = pnand %p1262_p11, %p1259_p10 }
  0x1e   : > { %1267 = shalt.err (!%p1264_p12)
}
  0x1f   : > { %s1268_s13 = scalar_lea.vmem %s1560_s14, 256  ;;  %p1276_p5 = scmp.lt.s32.totalorder %s1560_s14, %s1560_s14 }
  0x20   : > { %p1269_p13 = scmp.ne.s32.totalorder %s1560_s14, %s1268_s13  ;;  %p1277_p4 = scmp.lt.s32.totalorder %s1268_s13, %s1268_s13 }
  0x22   : > { %p1271_p0 = pnand %p1269_p13, %p1587_p8  ;;  %p1278_p7 = por %p1277_p4, %p1276_p5 }
  0x24   : > { %p1272_p2 = pneg %p1271_p0 }
  0x26   : > { %p1279_p9 = pnand %p1278_p7, %p1272_p2 }
  0x28   : > { %1282 = shalt.err (!%p1279_p9)
}
  0x29   : > { %s1476_s17 = smov 128   ;;  %s1477_s20 = smov 8  }
  0x2a   : > { %1186 = dma.hbm_to_vmem [thread:$0]  (!%p1571_p6), %s1893_s1, 256, %s1560_s14, [#allocation6], %s1476_s17, %s1476_s17, %s1477_s20  }
  0x2b   : > { %s1283_s26 = scalar_lea.hbm %s1880_s5, 2048 }
  0x2c   : > { %p1284_p4 = scmp.ne.s32.totalorder %s1880_s5, %s1283_s26  ;;  %p1290_p12 = scmp.lt.u32.totalorder %s1283_s26, %s1880_s5 }
  0x2e   : > { %p1286_p10 = pnand %p1284_p4, %p1587_p8 }
  0x30   : > { %p1287_p11 = pneg %p1286_p10 }
  0x32   : > { %p1292_p13 = pnand %p1290_p12, %p1287_p11 }
  0x34   : > { %1295 = shalt.err (!%p1292_p13)
}
  0x35   : > { %s1296_s14 = scalar_lea.vmem %s1575_s18, 2048  ;;  %p1304_p7 = scmp.lt.s32.totalorder %s1575_s18, %s1575_s18 }
  0x36   : > { %p1297_p0 = scmp.ne.s32.totalorder %s1575_s18, %s1296_s14  ;;  %p1305_p9 = scmp.lt.s32.totalorder %s1296_s14, %s1296_s14 }
  0x38   : > { %p1299_p2 = pnand %p1297_p0, %p1587_p8  ;;  %p1306_p4 = por %p1305_p9, %p1304_p7 }
  0x3a   : > { %p1300_p5 = pneg %p1299_p2 }
  0x3c   : > { %p1307_p10 = pnand %p1306_p4, %p1300_p5 }
  0x3e   : > { %1310 = shalt.err (!%p1307_p10)
}
  0x3f   : > { %1192 = dma.hbm_to_vmem [thread:$0]  (!%p1571_p6), %s1880_s5, 2048, %s1575_s18, [#allocation9], %s1476_s17, %s1476_s17, %s1477_s20  }
  0x40   : > { %s1311_s25 = scalar_lea.hbm %s1878_s3, 2048 }
  0x41   : > { %p1312_p11 = scmp.ne.s32.totalorder %s1878_s3, %s1311_s25  ;;  %p1318_p0 = scmp.lt.u32.totalorder %s1311_s25, %s1878_s3 }
  0x43   : > { %p1314_p12 = pnand %p1312_p11, %p1587_p8 }
  0x45   : > { %p1315_p13 = pneg %p1314_p12 }
  0x47   : > { %p1320_p2 = pnand %p1318_p0, %p1315_p13 }
  0x49   : > { %1323 = shalt.err (!%p1320_p2)
}
  0x4a   : > { %s1324_s18 = scalar_lea.vmem %s1577_s21, 2048  ;;  %p1332_p4 = scmp.lt.s32.totalorder %s1577_s21, %s1577_s21 }
  0x4b   : > { %p1325_p5 = scmp.ne.s32.totalorder %s1577_s21, %s1324_s18  ;;  %p1333_p10 = scmp.lt.s32.totalorder %s1324_s18, %s1324_s18 }
  0x4d   : > { %p1327_p7 = pnand %p1325_p5, %p1587_p8  ;;  %p1334_p11 = por %p1333_p10, %p1332_p4 }
  0x4f   : > { %p1328_p9 = pneg %p1327_p7 }
  0x51   : > { %p1335_p12 = pnand %p1334_p11, %p1328_p9 }
  0x53   : > { %1338 = shalt.err (!%p1335_p12)
}
  0x54   : > { %1189 = dma.hbm_to_vmem [thread:$0]  (!%p1571_p6), %s1878_s3, 2048, %s1577_s21, [#allocation6], %s1476_s17, %s1476_s17, %s1477_s20  }
  0x55   : > { %s1478_s22 = smov [#allocation10]   ;;  %s1339_s26 = scalar_lea.hbm %s1882_s7, 2048 }
  0x56   : > { %s312_s23 = sshll.u32 %s1478_s22, 4  ;;  %p1340_p13 = scmp.ne.s32.totalorder %s1882_s7, %s1339_s26  ;;  %s313_s23 = int_to_ptr.vmem [resolvable:$true] %s312_s23 }
  0x57   : > { %p1346_p5 = scmp.lt.u32.totalorder %s1339_s26, %s1882_s7 }
  0x58   : > { %p1342_p0 = pnand %p1340_p13, %p1587_p8 }
  0x5a   : > { %p1343_p2 = pneg %p1342_p0 }
  0x5c   : > { %p1348_p7 = pnand %p1346_p5, %p1343_p2 }
  0x5e   : > { %1351 = shalt.err (!%p1348_p7)
}
  0x5f   : > { %s1352_s21 = scalar_lea.vmem %s313_s23, 2048  ;;  %p1360_p11 = scmp.lt.s32.totalorder %s313_s23, %s313_s23 }
  0x60   : > { %p1353_p9 = scmp.ne.s32.totalorder %s313_s23, %s1352_s21  ;;  %p1361_p12 = scmp.lt.s32.totalorder %s1352_s21, %s1352_s21 }
  0x62   : > { %p1355_p4 = pnand %p1353_p9, %p1587_p8  ;;  %p1362_p1 = por %p1361_p12, %p1360_p11 }
  0x64   : > { %p1356_p10 = pneg %p1355_p4 }
  0x66   : > { %p1363_p3 = pnand %p1362_p1, %p1356_p10 }
  0x68   : > { %1366 = shalt.err (!%p1363_p3)
}
  0x69   : > { %1195 = dma.hbm_to_vmem [thread:$0]  (!%p1571_p6), %s1882_s7, 2048, %s313_s23, [#allocation9], %s1476_s17, %s1476_s17, %s1477_s20  }
  0x6a   : > { %s897_s19 = sadd.s32 4294967294, %s1471_s12   ;;  %s1686_s27 = sadd.s32 1, %s1471_s12  }
  0x6b   : > { %s31_s22 = ssub.s32 %s1471_s12, %s1686_s27  ;;  %s34_s24 = sadd.s32 1, %s1467_s11 }
  0x6c   : > { %p32_p1 = scmp.eq.s32.totalorder %s31_s22, 0  ;;  %p41_p3 = scmp.ne.s32.totalorder %s1467_s11, %s1463_s10 }
  0x6d   : > { %p42_p8 = scmp.eq.s32.totalorder %s1471_s12, 0  ;;  %p47_p13 = scmp.ne.s32.totalorder %s1463_s10, %s1459_s30 }
  0x6e   : > { %s1697_s25 = scalar_select %p32_p1, %s1467_s11, %s34_s24  }
  0x6f   : > { %p1699_p0 = por %p42_p8, %p41_p3  ;;  %p1896_p2 = scmp.eq.s32.totalorder %s1555_s15, 0 }
  0x70   : > { %p239_p5 = scmp.eq.s32.totalorder %s1555_s15, 1  ;;  %p245_p7 = scmp.eq.s32.totalorder %s897_s19, 1 }
  0x71   : > { %p1705_p6 = por %p1896_p2, %p47_p13  ;;  %p1208_p9 = scmp.lt.s32.totalorder %s1471_s12, 2 }
  0x72   : > { %s329_s20 = sand.u32 1, %s1467_s11   ;;  %p1712_p4 = por %p239_p5, %p41_p3 }
  0x73   : > { %p1716_p10 = por %p245_p7, %p47_p13  ;;  %s904_s29 = sshll.u32 %s329_s20, 3 }
  0x74   : > { %s1898_s23 = scalar_select %p1712_p4, 1, 0 }
  0x75   : > { %s1899_s28 = scalar_select %p1716_p10, 1, 0 }
  0x76   : > { %s905_s13 = sshll.u32 %s1471_s12, 7  ;;  %s333_s9 = scalar_lea.vmem [#allocation2], %s904_s29 }
  0x77   : > { %s1724_s14 = scalar_lea.hbm %s1875_s0, %s905_s13  ;;  %s340_s19 = sshll.u32 %s333_s9, 4  ;;  %s1726_s19 = int_to_ptr.vmem [resolvable:$true] %s340_s19 }
  0x78   : > { %p1730_p11 = pnand %p1208_p9, %p1699_p0  ;;  %s330_s24 = scalar_lea.sflag [#allocation3], %s329_s20 }
  0x79   : > { %s1367_s1 = scalar_lea.hbm %s1724_s14, 128  ;;  %s1372_s18 = scalar_lea.hbm %s1875_s0, 256 }
  0x7a   : > { %p1368_p12 = scmp.ne.s32.totalorder %s1724_s14, %s1367_s1  ;;  %p1369_p1 = pneg %p1730_p11 }
  0x7b   : > { %p1373_p13 = scmp.lt.u32.totalorder %s1724_s14, %s1875_s0  ;;  %p1374_p0 = scmp.lt.u32.totalorder %s1372_s18, %s1367_s1 }
  0x7c   : > { %p1370_p3 = pnand %p1369_p1, %p1368_p12  ;;  %p1376_p5 = scmp.lt.u32.totalorder %s1367_s1, %s1724_s14 }
  0x7d   : > { %p1375_p2 = por %p1374_p0, %p1373_p13 }
  0x7e   : > { %p1371_p8 = pneg %p1370_p3 }
  0x7f   : > { %p1377_p7 = por %p1376_p5, %p1375_p2 }
  0x81   : > { %p1378_p9 = pnand %p1377_p7, %p1371_p8 }
  0x83   : > { %1381 = shalt.err (!%p1378_p9)
}
  0x84   : > { %s1382_s20 = scalar_lea.vmem %s1726_s19, 128  ;;  %s1479_s9 = smov [#allocation2]  }
  0x85   : > { %p1383_p12 = scmp.ne.s32.totalorder %s1726_s19, %s1382_s20  ;;  %s1387_s29 = sshll.u32 %s1479_s9, 4  ;;  %s1388_s29 = int_to_ptr.vmem [resolvable:$false] %s1387_s29 }
  0x86   : > { %s1389_s13 = scalar_lea.vmem %s1388_s29, 256  ;;  %p1390_p4 = scmp.lt.s32.totalorder %s1726_s19, %s1388_s29 }
  0x87   : > { %p1385_p3 = pnand %p1383_p12, %p1369_p1  ;;  %p1391_p13 = scmp.lt.s32.totalorder %s1389_s13, %s1382_s20 }
  0x89   : > { %p1386_p10 = pneg %p1385_p3  ;;  %p1392_p0 = por %p1391_p13, %p1390_p4 }
  0x8b   : > { %p1393_p2 = pnand %p1392_p0, %p1386_p10 }
  0x8d   : > { %1396 = shalt.err (!%p1393_p2)
}
  0x8e   : > { %1199 = dma.hbm_to_vmem [thread:$0]  (!%p1730_p11), %s1724_s14, 128, %s1726_s19, %s330_s24  }
  0x8f   : > { %p1901_p8 = scmp.ne.s32.totalorder %s1891_s16, 0 }
  0x90   : > { %s1762_s1 = sand.u32 (!%p1901_p8), 1, %s1463_s10  }
  0x91   : > { %349 = sbr.rel (%p1901_p8) target bundleno = 1045 (0x415), region = 56  ;;  %s907_s18 = sshll.u32 (!%p1901_p8), %s1762_s1, 3 }
  0x92   : > { %s352_s26 = scalar_lea.sflag (!%p1901_p8), [#allocation3], %s1762_s1  ;;  %s355_s21 = scalar_lea.vmem (!%p1901_p8), [#allocation2], %s907_s18 }
  0x98   : > { %1442 = dma.done.wait (%p1705_p6), %s352_s26, 128  }
  0x99   : > { %1444 = vsyncadd (%p1705_p6), %s352_s26, 4294967168  ;;  %p1902_p4 = scmp.eq.s32.totalorder %s1555_s15, 0 }
  0x9b   : > { %1446 = dma.done.wait (%p1902_p4), [#allocation6], 2304   ;;  %p1903_p10 = pmov %p1902_p4 }
  0x9c   : > { %p1904_p11 = pmov %p1902_p4 }
  0x9d   : > { %1448 = vsyncadd (%p1903_p10), [#allocation6], 4294964992 }
  0x9e   : > { %1450 = dma.done.wait (%p1904_p11), [#allocation9], 4096   ;;  %p1905_p1 = pmov %p1902_p4 }
  0x9f   : > { %v1480_v0 = vmov 0.0|0.0   ;;  %vm1481_vm0 = vmmov 0   ;;  %v1482_v1 = vmov 0.0   ;;  %v407_v2 = vld [vmem:[#allocation5] sm:$0xff]  ;;  %v408_v3 = vld [vmem:[#allocation5 + $0x8] sm:$0xff]  ;;  %v491_v5 = vld [vmem:[#allocation7] sm:$0xff] }
  0xa0   : > { %1452 = vsyncadd (%p1905_p1), [#allocation9], 4294963200  ;;  %1088 = vmatprep.subr.bf16.mxu0 %v1480_v0  ;;  %980 = vmatprep.mubr.msk.f32.mxu0 %vm1481_vm0, %v1482_v1  ;;  %v1089_v4 = vpack.c.bf16 %v408_v3, %v407_v2  ;;  %v492_v6 = vld [vmem:[#allocation7 + $0x8] sm:$0xff]  ;;  %v493_v7 = vld [vmem:[#allocation7 + $0x10] sm:$0xff]  ;;  %vm416_vm1 = vcmask 130048   ;;  %s919_s29 = sshll.u32 %s1555_s15, 7 }
  0xa1   : > { %1091 = vmatprep.subr.bf16.mxu1 %v1480_v0  ;;  %1015 = vmatprep.mubr.msk.f32.mxu1 %vm1481_vm0, %v1482_v1  ;;  %v1092_v8 = vpack.c.bf16 %v492_v6, %v491_v5  ;;  %v494_v9 = vld [vmem:[#allocation7 + $0x18] sm:$0xff]  ;;  %v406_v10 = vld [vmem:[%s355_s21] sm:$0xff]  ;;  %v497_v15 = vld [vmem:[#allocation7 + $0x30] sm:$0xff]  ;;  %s405_s13 = scalar_lea.vmem [#allocation11], %s907_s18  ;;  %s1906_s17 = sld [smem:[#allocation17_spill]] }
  0xa2   : > { %1090 = vmatpush3.bf16.msra.mxu0 %v1089_v4  ;;  %v1095_v11 = vpack.c.bf16 %v494_v9, %v493_v7  ;;  %v495_v12 = vld [vmem:[#allocation7 + $0x20] sm:$0xff]  ;;  %v496_v13 = vld [vmem:[#allocation7 + $0x28] sm:$0xff]  ;;  %v498_v16 = vld [vmem:[#allocation7 + $0x38] sm:$0xff]  ;;  %s789_s26 = sshll.u32 %s405_s13, 4  ;;  %s776_s19 = scalar_lea.sflag [#allocation4], %s1762_s1  ;;  %s1833_s26 = int_to_ptr.vmem [resolvable:$true] %s789_s26 }
  0xa3   : > { %1093 = vmatpush3.bf16.msra.mxu1 %v1092_v8  ;;  %1115 = vmatprep.subr.bf16.mxu0 %v1480_v0  ;;  %v1098_v14 = vpack.c.bf16 %v496_v13, %v495_v12  ;;  %v1101_v17 = vpack.c.bf16 %v498_v16, %v497_v15  ;;  %v499_v18 = vld [vmem:[#allocation7 + $0x40] sm:$0xff]  ;;  %v500_v19 = vld [vmem:[#allocation7 + $0x48] sm:$0xff]  ;;  %v501_v21 = vld [vmem:[#allocation7 + $0x50] sm:$0xff]  ;;  %s1397_s22 = scalar_lea.vmem %s1833_s26, 128  ;;  %p1907_p5 = scmp.ne.s32.totalorder %s1898_s23, 0 }
  0xa4   : > { %1094 = vmatprep.subr.bf16.mxu1 %v1480_v0  ;;  %v1104_v20 = vpack.c.bf16 %v500_v19, %v499_v18  ;;  %v502_v22 = vld [vmem:[#allocation7 + $0x58] sm:$0xff]  ;;  %v503_v24 = vld [vmem:[#allocation7 + $0x60] sm:$0xff]  ;;  %v504_v25 = vld [vmem:[#allocation7 + $0x68] sm:$0xff]  ;;  %p1398_p6 = scmp.ne.s32.totalorder %s1833_s26, %s1397_s22  ;;  %s1483_s15 = smov [#allocation11]  }
  0xa5   : > { %981 = vmatmul.mubr.msk.f32.vlgmr.msra.gmra.mrb[0].mxu0 %vm416_vm1, %v406_v10  ;;  %v1107_v23 = vpack.c.bf16 %v502_v22, %v501_v21  ;;  %v1110_v26 = vpack.c.bf16 %v504_v25, %v503_v24  ;;  %v505_v27 = vld [vmem:[#allocation7 + $0x70] sm:$0xff]  ;;  %v506_v28 = vld [vmem:[#allocation7 + $0x78] sm:$0xff]  ;;  %v586_v30 = vld [vmem:[#allocation8] sm:$0xff]  ;;  %s1401_s18 = sshll.u32 %s1483_s15, 4  ;;  %s1402_s18 = int_to_ptr.vmem [resolvable:$false] %s1401_s18 }
  0xa6   : > { %1050 = vmatprep.mubr.msk.f32.mxu0 %vm1481_vm0, %v1482_v1  ;;  %v1113_v29 = vpack.c.bf16 %v506_v28, %v505_v27  ;;  %v587_v31 = vld [vmem:[#allocation8 + $0x8] sm:$0xff]  ;;  %v588_v32 = vld [vmem:[#allocation8 + $0x10] sm:$0xff]  ;;  %v589_v34 = vld [vmem:[#allocation8 + $0x18] sm:$0xff]  ;;  %p1399_p7 = pnand %p1398_p6, %p1907_p5  ;;  %s1403_s24 = scalar_lea.vmem %s1402_s18, 256 }
  0xa7   : > { %1096 = vmatpush3.bf16.msra.mxu1 %v1095_v11  ;;  %v1116_v33 = vpack.c.bf16 %v587_v31, %v586_v30  ;;  %v1119_v35 = vpack.c.bf16 %v589_v34, %v588_v32  ;;  %v590_v36 = vld [vmem:[#allocation8 + $0x20] sm:$0xff]  ;;  %v591_v37 = vld [vmem:[#allocation8 + $0x28] sm:$0xff]  ;;  %v592_v39 = vld [vmem:[#allocation8 + $0x30] sm:$0xff]  ;;  %s1831_s14 = scalar_lea.hbm %s1906_s17, %s919_s29  ;;  %p1404_p12 = scmp.lt.s32.totalorder %s1833_s26, %s1402_s18 }
  0xa8   : > { %1097 = vmatprep.subr.bf16.mxu1 %v1480_v0  ;;  %v1122_v38 = vpack.c.bf16 %v591_v37, %v590_v36  ;;  %v593_v40 = vld [vmem:[#allocation8 + $0x38] sm:$0xff]  ;;  %v594_v42 = vld [vmem:[#allocation8 + $0x40] sm:$0xff]  ;;  %v595_v43 = vld [vmem:[#allocation8 + $0x48] sm:$0xff]  ;;  %p1400_p9 = pneg %p1399_p7  ;;  %p1405_p3 = scmp.lt.s32.totalorder %s1403_s24, %s1397_s22 }
  0xa9   : > { %1117 = vmatpush3.bf16.msra.mxu0 %v1116_v33  ;;  %v1125_v41 = vpack.c.bf16 %v593_v40, %v592_v39  ;;  %v1128_v44 = vpack.c.bf16 %v595_v43, %v594_v42  ;;  %v596_v45 = vld [vmem:[#allocation8 + $0x50] sm:$0xff]  ;;  %v597_v46 = vld [vmem:[#allocation8 + $0x58] sm:$0xff]  ;;  %v913_v48 = vld [vmem:[%s1877_s2] ss:$0 sm:$0xff] }
  0xaa   : > { %1118 = vmatprep.subr.bf16.mxu0 %v1480_v0  ;;  %v1131_v47 = vpack.c.bf16 %v597_v46, %v596_v45  ;;  %v598_v53 = vld [vmem:[#allocation8 + $0x60] sm:$0xff]  ;;  %v599_v54 = vld [vmem:[#allocation8 + $0x68] sm:$0xff]  ;;  %v600_v56 = vld [vmem:[#allocation8 + $0x70] sm:$0xff]  ;;  %p1406_p13 = por %p1405_p3, %p1404_p12 }
  0xab   : > { %1099 = vmatpush3.bf16.msra.mxu1 %v1098_v14  ;;  %v1134_v55 = vpack.c.bf16 %v599_v54, %v598_v53  ;;  %v601_v57 = vld [vmem:[#allocation8 + $0x78] sm:$0xff]  ;;  %v681_v59 = vld [vmem:[#allocation10] sm:$0xff]  ;;  %v682_v60 = vld [vmem:[#allocation10 + $0x8] sm:$0xff] }
  0xac   : > { %1100 = vmatprep.subr.bf16.mxu1 %v1480_v0  ;;  %v1137_v58 = vpack.c.bf16 %v601_v57, %v600_v56  ;;  %v683_v61 = vld [vmem:[#allocation10 + $0x10] sm:$0xff]  ;;  %v1140_v62 = vpack.c.bf16 %v682_v60, %v681_v59  ;;  %v684_v63 = vld [vmem:[#allocation10 + $0x18] sm:$0xff]  ;;  %v686_v3 = vld [vmem:[#allocation10 + $0x28] sm:$0xff]  ;;  %p1407_p0 = pnand %p1406_p13, %p1400_p9 }
  0xad   : > { %1120 = vmatpush3.bf16.msra.mxu0 %v1119_v35  ;;  %v1143_v2 = vpack.c.bf16 %v684_v63, %v683_v61  ;;  %v687_v5 = vld [vmem:[#allocation10 + $0x30] sm:$0xff]  ;;  %v688_v6 = vld [vmem:[#allocation10 + $0x38] sm:$0xff]  ;;  %v689_v8 = vld [vmem:[#allocation10 + $0x40] sm:$0xff] }
  0xae   : > { %1121 = vmatprep.subr.bf16.mxu0 %v1480_v0  ;;  %v1149_v7 = vpack.c.bf16 %v688_v6, %v687_v5  ;;  %v690_v9 = vld [vmem:[#allocation10 + $0x48] sm:$0xff]  ;;  %v691_v11 = vld [vmem:[#allocation10 + $0x50] sm:$0xff]  ;;  %v692_v12 = vld [vmem:[#allocation10 + $0x58] sm:$0xff] }
  0xaf   : > { %1102 = vmatpush3.bf16.msra.mxu1 %v1101_v17  ;;  %v1152_v10 = vpack.c.bf16 %v690_v9, %v689_v8  ;;  %v1155_v13 = vpack.c.bf16 %v692_v12, %v691_v11  ;;  %v915_v14 = vld [vmem:[%s1879_s4] ss:$0 sm:$0xff]  ;;  %v694_v21 = vld [vmem:[#allocation10 + $0x68] sm:$0xff]  ;;  %v696_v24 = vld [vmem:[#allocation10 + $0x78] sm:$0xff] }
  0xb0   : > { %1103 = vmatprep.subr.bf16.mxu1 %v1480_v0 }
  0xb1   : > { %1123 = vmatpush3.bf16.msra.mxu0 %v1122_v38 }
  0xb2   : > { %1124 = vmatprep.subr.bf16.mxu0 %v1480_v0 }
  0xb3   : > { %1105 = vmatpush3.bf16.msra.mxu1 %v1104_v20  ;;  %v693_v20 = vld [vmem:[#allocation10 + $0x60] sm:$0xff] }
  0xb4   : > { %1106 = vmatprep.subr.bf16.mxu1 %v1480_v0  ;;  %v1158_v22 = vpack.c.bf16 %v694_v21, %v693_v20 }
  0xb5   : > { %1126 = vmatpush3.bf16.msra.mxu0 %v1125_v41 }
  0xb6   : > { %1127 = vmatprep.subr.bf16.mxu0 %v1480_v0 }
  0xb7   : > { %1108 = vmatpush3.bf16.msra.mxu1 %v1107_v23  ;;  %v695_v23 = vld [vmem:[#allocation10 + $0x70] sm:$0xff] }
  0xb8   : > { %1109 = vmatprep.subr.bf16.mxu1 %v1480_v0  ;;  %v1161_v25 = vpack.c.bf16 %v696_v24, %v695_v23 }
  0xb9   : > { %1129 = vmatpush3.bf16.msra.mxu0 %v1128_v44 }
  0xba   : > { %1130 = vmatprep.subr.bf16.mxu0 %v1480_v0 }
  0xbb   : > { %1111 = vmatpush3.bf16.msra.mxu1 %v1110_v26  ;;  %v916_v26 = vld [vmem:[%s1881_s6] ss:$0 sm:$0xff] }
  0xbc   : > { %1112 = vmatprep.subr.bf16.mxu1 %v1480_v0 }
  0xbd   : > { %1132 = vmatpush3.bf16.msra.mxu0 %v1131_v47 }
  0xbe   : > { %1133 = vmatprep.subr.bf16.mxu0 %v1480_v0 }
  0xbf   : > { %1114 = vmatpush3.bf16.msra.mxu1 %v1113_v29 }
  0xc0   : > { %1139 = vmatprep.subr.bf16.mxu1 %v1480_v0 }
  0xc1   : > { %1135 = vmatpush3.bf16.msra.mxu0 %v1134_v55 }
  0xc2   : > { %1136 = vmatprep.subr.bf16.mxu0 %v1480_v0 }
  0xc5   : > { %1138 = vmatpush3.bf16.msra.mxu0 %v1137_v58 }
 0x178   : > { %v486_v49 = vpop.f32.mrb[0].mxu0 }
 0x179   : > { %v487_v50 = vadd.f32 %v913_v48, %v486_v49  ;;  %v982_v51 = vpop.f32.mrb[1].mxu0 }
 0x17b   : > { %v490_v52 = vmax.f32 %v487_v50, 0.0 }
 0x17d   : > { %1016 = vmatmul.mubr.f32.vlgmr.msra.gmra.mrb[0].mxu1 %v490_v52 }
 0x17e   : > { %1085 = vmatprep.mubr.msk.f32.mxu1 %vm1481_vm0, %v1482_v1  ;;  %1141 = vmatpush3.bf16.msra.mxu1 %v1140_v62  ;;  %v685_v1 = vld [vmem:[#allocation10 + $0x20] sm:$0xff] }
 0x17f   : > { %1142 = vmatprep.subr.bf16.mxu1 %v1480_v0  ;;  %v1146_v4 = vpack.c.bf16 %v686_v3, %v685_v1 }
 0x182   : > { %1144 = vmatpush3.bf16.msra.mxu1 %v1143_v2 }
 0x183   : > { %1145 = vmatprep.subr.bf16.mxu1 %v1480_v0 }
 0x186   : > { %1147 = vmatpush3.bf16.msra.mxu1 %v1146_v4 }
 0x187   : > { %1148 = vmatprep.subr.bf16.mxu1 %v1480_v0 }
 0x18a   : > { %1150 = vmatpush3.bf16.msra.mxu1 %v1149_v7 }
 0x18b   : > { %1151 = vmatprep.subr.bf16.mxu1 %v1480_v0 }
 0x18e   : > { %1153 = vmatpush3.bf16.msra.mxu1 %v1152_v10 }
 0x18f   : > { %1154 = vmatprep.subr.bf16.mxu1 %v1480_v0 }
 0x192   : > { %1156 = vmatpush3.bf16.msra.mxu1 %v1155_v13 }
 0x193   : > { %1157 = vmatprep.subr.bf16.mxu1 %v1480_v0 }
 0x196   : > { %1159 = vmatpush3.bf16.msra.mxu1 %v1158_v22 }
 0x197   : > { %1160 = vmatprep.subr.bf16.mxu1 %v1480_v0  ;;  %v917_v0 = vld [vmem:[%s1883_s8] ss:$0 sm:$0xff] }
 0x19a   : > { %1162 = vmatpush3.bf16.msra.mxu1 %v1161_v25 }
 0x250   : > { %v580_v15 = vpop.f32.mrb[0].mxu1 }
 0x251   : > { %v581_v16 = vadd.f32 %v915_v14, %v580_v15  ;;  %v1017_v17 = vpop.f32.mrb[1].mxu1 }
 0x253   : > { %v584_v18 = vmax.f32 %v581_v16, 0.0 }
 0x255   : > { %v585_v19 = vadd.f32 %v584_v18, %v490_v52 }
 0x257   : > { %1051 = vmatmul.mubr.f32.vlgmr.msra.gmra.mrb[2].mxu0 %v585_v19 }
 0x32a   : > { %v675_v27 = vpop.f32.mrb[2].mxu0 }
 0x32b   : > { %v676_v28 = vadd.f32 %v916_v26, %v675_v27  ;;  %v1052_v29 = vpop.f32.mrb[3].mxu0 }
 0x32d   : > { %v679_v30 = vmax.f32 %v676_v28, 0.0 }
 0x32f   : > { %v680_v31 = vadd.f32 %v679_v30, %v585_v19 }
 0x331   : > { %1086 = vmatmul.mubr.f32.vlgmr.msra.gmra.mrb[2].mxu1 %v680_v31 }
 0x404   : > { %v770_v32 = vpop.f32.mrb[2].mxu1 }
 0x405   : > { %v771_v33 = vadd.f32 %v917_v0, %v770_v32  ;;  %v1087_v34 = vpop.f32.mrb[3].mxu1 }
 0x407   : > { %774 = vst [vmem:[%s405_s13] sm:$0xff] %v771_v33 }
 0x408   : > { %1410 = shalt.err (!%p1407_p0)
}
 0x409   : > { %s1411_s1 = scalar_lea.hbm %s1831_s14, 128  ;;  %s1415_s29 = scalar_lea.hbm %s1906_s17, 256 }
 0x40a   : > { %p1412_p2 = scmp.ne.s32.totalorder %s1831_s14, %s1411_s1  ;;  %p1416_p10 = scmp.lt.u32.totalorder %s1831_s14, %s1906_s17 }
 0x40b   : > { %p1417_p11 = scmp.lt.u32.totalorder %s1415_s29, %s1411_s1  ;;  %p1419_p6 = scmp.lt.u32.totalorder %s1411_s1, %s1831_s14 }
 0x40c   : > { %p1413_p8 = pnand %p1412_p2, %p1907_p5 }
 0x40d   : > { %p1418_p1 = por %p1417_p11, %p1416_p10 }
 0x40e   : > { %p1414_p4 = pneg %p1413_p8 }
 0x40f   : > { %p1420_p7 = por %p1419_p6, %p1418_p1 }
 0x411   : > { %p1421_p9 = pnand %p1420_p7, %p1414_p4 }
 0x413   : > { %1424 = shalt.err (!%p1421_p9)
}
 0x414   : > { %1181 = dma.vmem_to_hbm [thread:$0]  (%p1907_p5), %s1833_s26, 128, %s1831_s14, %s776_s19  }
 0x415 PF: > { %s801_s16 = sand.u32 1, %s1459_s30   ;;  %p1908_p12 = scmp.ne.s32.totalorder %s1899_s28, 0 }
 0x416   : > { %p1909_p3 = scmp.ge.s32.totalorder %s1471_s12, 2  ;;  %s802_s22 = scalar_lea.sflag [#allocation4], %s801_s16 }
 0x418   : > { %p1201_p13 = pnand %p1909_p3, %p1908_p12 }
 0x41a   : > { %1454 = dma.done.wait (!%p1201_p13), %s802_s22, 128  }
 0x41b   : > { %1456 = vsyncadd (!%p1201_p13), %s802_s22, 4294967168  ;;  %p24_p0 = scmp.ge.s32.totalorder %s1686_s27, 4   ;;  %s1910_s30 = smov %s1463_s10 }
 0x41c   : > { %s1911_s10 = smov %s1467_s11  ;;  %s1912_s11 = smov %s1697_s25 }
 0x41d   : > { %s1913_s12 = smov %s1686_s27  ;;  %26 = sbr.rel (!%p24_p0) target bundleno = 10 (0xa), region = 117 }
 0x424   :  { %807 = vsyncpa [#allocation3], 1 }
 0x425   :  { %809 = vsyncpa [#allocation3 + $0x1], 1 }
 0x426   :  { %810 = vsyncpa [#allocation6], 1 }
 0x427   :  { %811 = vsyncpa [#allocation9], 1 }
 0x428   :  { %812 = vsyncpa [#allocation4], 1 }
 0x429   :  { %814 = vsyncpa [#allocation4 + $0x1], 1 }

// kernel: tpu_custom_call.1
= control target key start
LH: loop header
LB: loop body
LE: loop exit
PB: predicated region body
PF: predicated region fallthrough
CT: control target
= control target key end

     0   :  { %s1875_s0 = inlined_call_operand.hbm [shape: f32[16,16], index: 0, kind: input, shape index: {}]   ;;  %s1876_s1 = inlined_call_operand.hbm [shape: f32[16,128], index: 1, kind: input, shape index: {}]   ;;  %s1877_s2 = inlined_call_operand.vmem [shape: f32[1,128], index: 2, kind: input, shape index: {}]   ;;  %s1878_s3 = inlined_call_operand.hbm [shape: f32[128,128], index: 3, kind: input, shape index: {}]   ;;  %s1879_s4 = inlined_call_operand.vmem [shape: f32[1,128], index: 4, kind: input, shape index: {}]   ;;  %s1880_s5 = inlined_call_operand.hbm [shape: f32[128,128], index: 5, kind: input, shape index: {}]   ;;  %s1881_s6 = inlined_call_operand.vmem [shape: f32[1,128], index: 6, kind: input, shape index: {}]   ;;  %s1882_s7 = inlined_call_operand.hbm [shape: f32[128,128], index: 7, kind: input, shape index: {}]   ;;  %s1883_s8 = inlined_call_operand.vmem [shape: f32[1,128], index: 8, kind: input, shape index: {}]   ;;  %s1884_s9 = inlined_call_operand.hbm [shape: f32[16,128], index: 9, kind: output, shape index: {}]  }
   0x1   :  { %1889 = sst [smem:[#allocation16_spill]] %s1876_s1 }
   0x2   :  { %1890 = sst [smem:[#allocation17_spill]] %s1884_s9 }
   0x3   :  { %14 = vsyncpa [#allocation3], 0 }
   0x4   :  { %16 = vsyncpa [#allocation3 + $0x1], 0 }
   0x5   :  { %17 = vsyncpa [#allocation6], 0 }
   0x6   :  { %18 = vsyncpa [#allocation9], 0 }
   0x7   :  { %19 = vsyncpa [#allocation4], 0 }
   0x8   :  { %21 = vsyncpa [#allocation4 + $0x1], 0  ;;  %s1534_s30 = smov 0   ;;  %s1536_s10 = smov 0  }
   0x9   :  { %s1538_s11 = smov 0   ;;  %s1540_s12 = smov 0  }
   0xa LB: > { %s1473_s13 = smov [#allocation5]   ;;  %s1555_s15 = sadd.s32 4294967295, %s1471_s12   ;;  %s1471_s12 = sphi %s1540_s12, %s1913_s12   ;;  %s1467_s11 = sphi %s1538_s11, %s1912_s11   ;;  %s1463_s10 = sphi %s1536_s10, %s1911_s10   ;;  %s1459_s30 = sphi %s1534_s30, %s1910_s30  }
   0xb   : > { %s264_s14 = sshll.u32 %s1473_s13, 4  ;;  %p898_p0 = scmp.ge.s32.totalorder %s1471_s12, 1  ;;  %s1560_s14 = int_to_ptr.vmem [resolvable:$true] %s264_s14 }
   0xc   : > { %p1886_p1 = scmp.eq.s32.totalorder %s1555_s15, 0  ;;  %p252_p2 = scmp.lt.s32.totalorder %s1471_s12, 3 }
   0xd   : > { %s1474_s17 = smov [#allocation8]   ;;  %s1475_s20 = smov [#allocation7]  }
   0xe   : > { %p1562_p3 = pnand %p898_p0, %p252_p2  ;;  %s296_s18 = sshll.u32 %s1474_s17, 4  ;;  %s1575_s18 = int_to_ptr.vmem [resolvable:$true] %s296_s18 }
   0xf   : > { %s280_s21 = sshll.u32 %s1475_s20, 4  ;;  %s1893_s1 = sld [smem:[#allocation16_spill]]  ;;  %s1577_s21 = int_to_ptr.vmem [resolvable:$true] %s280_s21 }
  0x10   : > { %s1891_s16 = scalar_select %p1562_p3, 1, 0 }
  0x11   : > { %p1183_p5 = pneg %p1562_p3 }
  0x13   : > { %p1571_p6 = pnand %p1183_p5, %p1886_p1 }
  0x15   : > { %s1255_s24 = scalar_lea.hbm %s1893_s1, 256  ;;  %p1587_p8 = pneg %p1571_p6 }
  0x16   : > { %p1256_p7 = scmp.ne.s32.totalorder %s1893_s1, %s1255_s24  ;;  %p1262_p11 = scmp.lt.u32.totalorder %s1255_s24, %s1893_s1 }
  0x18   : > { %p1258_p9 = pnand %p1587_p8, %p1256_p7 }
  0x1a   : > { %p1259_p10 = pneg %p1258_p9 }
  0x1c   : > { %p1264_p12 = pnand %p1262_p11, %p1259_p10 }
  0x1e   : > { %1267 = shalt.err (!%p1264_p12)
}
  0x1f   : > { %s1268_s13 = scalar_lea.vmem %s1560_s14, 256  ;;  %p1276_p5 = scmp.lt.s32.totalorder %s1560_s14, %s1560_s14 }
  0x20   : > { %p1269_p13 = scmp.ne.s32.totalorder %s1560_s14, %s1268_s13  ;;  %p1277_p4 = scmp.lt.s32.totalorder %s1268_s13, %s1268_s13 }
  0x22   : > { %p1271_p0 = pnand %p1269_p13, %p1587_p8  ;;  %p1278_p7 = por %p1277_p4, %p1276_p5 }
  0x24   : > { %p1272_p2 = pneg %p1271_p0 }
  0x26   : > { %p1279_p9 = pnand %p1278_p7, %p1272_p2 }
  0x28   : > { %1282 = shalt.err (!%p1279_p9)
}
  0x29   : > { %s1476_s17 = smov 128   ;;  %s1477_s20 = smov 8  }
  0x2a   : > { %1186 = dma.hbm_to_vmem [thread:$0]  (!%p1571_p6), %s1893_s1, 256, %s1560_s14, [#allocation6], %s1476_s17, %s1476_s17, %s1477_s20  }
  0x2b   : > { %s1283_s26 = scalar_lea.hbm %s1880_s5, 2048 }
  0x2c   : > { %p1284_p4 = scmp.ne.s32.totalorder %s1880_s5, %s1283_s26  ;;  %p1290_p12 = scmp.lt.u32.totalorder %s1283_s26, %s1880_s5 }
  0x2e   : > { %p1286_p10 = pnand %p1284_p4, %p1587_p8 }
  0x30   : > { %p1287_p11 = pneg %p1286_p10 }
  0x32   : > { %p1292_p13 = pnand %p1290_p12, %p1287_p11 }
  0x34   : > { %1295 = shalt.err (!%p1292_p13)
}
  0x35   : > { %s1296_s14 = scalar_lea.vmem %s1575_s18, 2048  ;;  %p1304_p7 = scmp.lt.s32.totalorder %s1575_s18, %s1575_s18 }
  0x36   : > { %p1297_p0 = scmp.ne.s32.totalorder %s1575_s18, %s1296_s14  ;;  %p1305_p9 = scmp.lt.s32.totalorder %s1296_s14, %s1296_s14 }
  0x38   : > { %p1299_p2 = pnand %p1297_p0, %p1587_p8  ;;  %p1306_p4 = por %p1305_p9, %p1304_p7 }
  0x3a   : > { %p1300_p5 = pneg %p1299_p2 }
  0x3c   : > { %p1307_p10 = pnand %p1306_p4, %p1300_p5 }
  0x3e   : > { %1310 = shalt.err (!%p1307_p10)
}
  0x3f   : > { %1192 = dma.hbm_to_vmem [thread:$0]  (!%p1571_p6), %s1880_s5, 2048, %s1575_s18, [#allocation9], %s1476_s17, %s1476_s17, %s1477_s20  }
  0x40   : > { %s1311_s25 = scalar_lea.hbm %s1878_s3, 2048 }
  0x41   : > { %p1312_p11 = scmp.ne.s32.totalorder %s1878_s3, %s1311_s25  ;;  %p1318_p0 = scmp.lt.u32.totalorder %s1311_s25, %s1878_s3 }
  0x43   : > { %p1314_p12 = pnand %p1312_p11, %p1587_p8 }
  0x45   : > { %p1315_p13 = pneg %p1314_p12 }
  0x47   : > { %p1320_p2 = pnand %p1318_p0, %p1315_p13 }
  0x49   : > { %1323 = shalt.err (!%p1320_p2)
}
  0x4a   : > { %s1324_s18 = scalar_lea.vmem %s1577_s21, 2048  ;;  %p1332_p4 = scmp.lt.s32.totalorder %s1577_s21, %s1577_s21 }
  0x4b   : > { %p1325_p5 = scmp.ne.s32.totalorder %s1577_s21, %s1324_s18  ;;  %p1333_p10 = scmp.lt.s32.totalorder %s1324_s18, %s1324_s18 }
  0x4d   : > { %p1327_p7 = pnand %p1325_p5, %p1587_p8  ;;  %p1334_p11 = por %p1333_p10, %p1332_p4 }
  0x4f   : > { %p1328_p9 = pneg %p1327_p7 }
  0x51   : > { %p1335_p12 = pnand %p1334_p11, %p1328_p9 }
  0x53   : > { %1338 = shalt.err (!%p1335_p12)
}
  0x54   : > { %1189 = dma.hbm_to_vmem [thread:$0]  (!%p1571_p6), %s1878_s3, 2048, %s1577_s21, [#allocation6], %s1476_s17, %s1476_s17, %s1477_s20  }
  0x55   : > { %s1478_s22 = smov [#allocation10]   ;;  %s1339_s26 = scalar_lea.hbm %s1882_s7, 2048 }
  0x56   : > { %s312_s23 = sshll.u32 %s1478_s22, 4  ;;  %p1340_p13 = scmp.ne.s32.totalorder %s1882_s7, %s1339_s26  ;;  %s313_s23 = int_to_ptr.vmem [resolvable:$true] %s312_s23 }
  0x57   : > { %p1346_p5 = scmp.lt.u32.totalorder %s1339_s26, %s1882_s7 }
  0x58   : > { %p1342_p0 = pnand %p1340_p13, %p1587_p8 }
  0x5a   : > { %p1343_p2 = pneg %p1342_p0 }
  0x5c   : > { %p1348_p7 = pnand %p1346_p5, %p1343_p2 }
  0x5e   : > { %1351 = shalt.err (!%p1348_p7)
}
  0x5f   : > { %s1352_s21 = scalar_lea.vmem %s313_s23, 2048  ;;  %p1360_p11 = scmp.lt.s32.totalorder %s313_s23, %s313_s23 }
  0x60   : > { %p1353_p9 = scmp.ne.s32.totalorder %s313_s23, %s1352_s21  ;;  %p1361_p12 = scmp.lt.s32.totalorder %s1352_s21, %s1352_s21 }
  0x62   : > { %p1355_p4 = pnand %p1353_p9, %p1587_p8  ;;  %p1362_p1 = por %p1361_p12, %p1360_p11 }
  0x64   : > { %p1356_p10 = pneg %p1355_p4 }
  0x66   : > { %p1363_p3 = pnand %p1362_p1, %p1356_p10 }
  0x68   : > { %1366 = shalt.err (!%p1363_p3)
}
  0x69   : > { %1195 = dma.hbm_to_vmem [thread:$0]  (!%p1571_p6), %s1882_s7, 2048, %s313_s23, [#allocation9], %s1476_s17, %s1476_s17, %s1477_s20  }
  0x6a   : > { %s897_s19 = sadd.s32 4294967294, %s1471_s12   ;;  %s1686_s27 = sadd.s32 1, %s1471_s12  }
  0x6b   : > { %s31_s22 = ssub.s32 %s1471_s12, %s1686_s27  ;;  %s34_s24 = sadd.s32 1, %s1467_s11 }
  0x6c   : > { %p32_p1 = scmp.eq.s32.totalorder %s31_s22, 0  ;;  %p41_p3 = scmp.ne.s32.totalorder %s1467_s11, %s1463_s10 }
  0x6d   : > { %p42_p8 = scmp.eq.s32.totalorder %s1471_s12, 0  ;;  %p47_p13 = scmp.ne.s32.totalorder %s1463_s10, %s1459_s30 }
  0x6e   : > { %s1697_s25 = scalar_select %p32_p1, %s1467_s11, %s34_s24  }
  0x6f   : > { %p1699_p0 = por %p42_p8, %p41_p3  ;;  %p1896_p2 = scmp.eq.s32.totalorder %s1555_s15, 0 }
  0x70   : > { %p239_p5 = scmp.eq.s32.totalorder %s1555_s15, 1  ;;  %p245_p7 = scmp.eq.s32.totalorder %s897_s19, 1 }
  0x71   : > { %p1705_p6 = por %p1896_p2, %p47_p13  ;;  %p1208_p9 = scmp.lt.s32.totalorder %s1471_s12, 2 }
  0x72   : > { %s329_s20 = sand.u32 1, %s1467_s11   ;;  %p1712_p4 = por %p239_p5, %p41_p3 }
  0x73   : > { %p1716_p10 = por %p245_p7, %p47_p13  ;;  %s904_s29 = sshll.u32 %s329_s20, 3 }
  0x74   : > { %s1898_s23 = scalar_select %p1712_p4, 1, 0 }
  0x75   : > { %s1899_s28 = scalar_select %p1716_p10, 1, 0 }
  0x76   : > { %s905_s13 = sshll.u32 %s1471_s12, 7  ;;  %s333_s9 = scalar_lea.vmem [#allocation2], %s904_s29 }
  0x77   : > { %s1724_s14 = scalar_lea.hbm %s1875_s0, %s905_s13  ;;  %s340_s19 = sshll.u32 %s333_s9, 4  ;;  %s1726_s19 = int_to_ptr.vmem [resolvable:$true] %s340_s19 }
  0x78   : > { %p1730_p11 = pnand %p1208_p9, %p1699_p0  ;;  %s330_s24 = scalar_lea.sflag [#allocation3], %s329_s20 }
  0x79   : > { %s1367_s1 = scalar_lea.hbm %s1724_s14, 128  ;;  %s1372_s18 = scalar_lea.hbm %s1875_s0, 256 }
  0x7a   : > { %p1368_p12 = scmp.ne.s32.totalorder %s1724_s14, %s1367_s1  ;;  %p1369_p1 = pneg %p1730_p11 }
  0x7b   : > { %p1373_p13 = scmp.lt.u32.totalorder %s1724_s14, %s1875_s0  ;;  %p1374_p0 = scmp.lt.u32.totalorder %s1372_s18, %s1367_s1 }
  0x7c   : > { %p1370_p3 = pnand %p1369_p1, %p1368_p12  ;;  %p1376_p5 = scmp.lt.u32.totalorder %s1367_s1, %s1724_s14 }
  0x7d   : > { %p1375_p2 = por %p1374_p0, %p1373_p13 }
  0x7e   : > { %p1371_p8 = pneg %p1370_p3 }
  0x7f   : > { %p1377_p7 = por %p1376_p5, %p1375_p2 }
  0x81   : > { %p1378_p9 = pnand %p1377_p7, %p1371_p8 }
  0x83   : > { %1381 = shalt.err (!%p1378_p9)
}
  0x84   : > { %s1382_s20 = scalar_lea.vmem %s1726_s19, 128  ;;  %s1479_s9 = smov [#allocation2]  }
  0x85   : > { %p1383_p12 = scmp.ne.s32.totalorder %s1726_s19, %s1382_s20  ;;  %s1387_s29 = sshll.u32 %s1479_s9, 4  ;;  %s1388_s29 = int_to_ptr.vmem [resolvable:$false] %s1387_s29 }
  0x86   : > { %s1389_s13 = scalar_lea.vmem %s1388_s29, 256  ;;  %p1390_p4 = scmp.lt.s32.totalorder %s1726_s19, %s1388_s29 }
  0x87   : > { %p1385_p3 = pnand %p1383_p12, %p1369_p1  ;;  %p1391_p13 = scmp.lt.s32.totalorder %s1389_s13, %s1382_s20 }
  0x89   : > { %p1386_p10 = pneg %p1385_p3  ;;  %p1392_p0 = por %p1391_p13, %p1390_p4 }
  0x8b   : > { %p1393_p2 = pnand %p1392_p0, %p1386_p10 }
  0x8d   : > { %1396 = shalt.err (!%p1393_p2)
}
  0x8e   : > { %1199 = dma.hbm_to_vmem [thread:$0]  (!%p1730_p11), %s1724_s14, 128, %s1726_s19, %s330_s24  }
  0x8f   : > { %p1901_p8 = scmp.ne.s32.totalorder %s1891_s16, 0 }
  0x90   : > { %s1762_s1 = sand.u32 (!%p1901_p8), 1, %s1463_s10  }
  0x91   : > { %349 = sbr.rel (%p1901_p8) target bundleno = 1045 (0x415), region = 56  ;;  %s907_s18 = sshll.u32 (!%p1901_p8), %s1762_s1, 3 }
  0x92   : > { %s352_s26 = scalar_lea.sflag (!%p1901_p8), [#allocation3], %s1762_s1  ;;  %s355_s21 = scalar_lea.vmem (!%p1901_p8), [#allocation2], %s907_s18 }
  0x98   : > { %1442 = dma.done.wait (%p1705_p6), %s352_s26, 128  }
  0x99   : > { %1444 = vsyncadd (%p1705_p6), %s352_s26, 4294967168  ;;  %p1902_p4 = scmp.eq.s32.totalorder %s1555_s15, 0 }
  0x9b   : > { %1446 = dma.done.wait (%p1902_p4), [#allocation6], 2304   ;;  %p1903_p10 = pmov %p1902_p4 }
  0x9c   : > { %p1904_p11 = pmov %p1902_p4 }
  0x9d   : > { %1448 = vsyncadd (%p1903_p10), [#allocation6], 4294964992 }
  0x9e   : > { %1450 = dma.done.wait (%p1904_p11), [#allocation9], 4096   ;;  %p1905_p1 = pmov %p1902_p4 }
  0x9f   : > { %v1480_v0 = vmov 0.0|0.0   ;;  %vm1481_vm0 = vmmov 0   ;;  %v1482_v1 = vmov 0.0   ;;  %v407_v2 = vld [vmem:[#allocation5] sm:$0xff]  ;;  %v408_v3 = vld [vmem:[#allocation5 + $0x8] sm:$0xff]  ;;  %v491_v5 = vld [vmem:[#allocation7] sm:$0xff] }
  0xa0   : > { %1452 = vsyncadd (%p1905_p1), [#allocation9], 4294963200  ;;  %1088 = vmatprep.subr.bf16.mxu0 %v1480_v0  ;;  %980 = vmatprep.mubr.msk.f32.mxu0 %vm1481_vm0, %v1482_v1  ;;  %v1089_v4 = vpack.c.bf16 %v408_v3, %v407_v2  ;;  %v492_v6 = vld [vmem:[#allocation7 + $0x8] sm:$0xff]  ;;  %v493_v7 = vld [vmem:[#allocation7 + $0x10] sm:$0xff]  ;;  %vm416_vm1 = vcmask 130048   ;;  %s919_s29 = sshll.u32 %s1555_s15, 7 }
  0xa1   : > { %1091 = vmatprep.subr.bf16.mxu1 %v1480_v0  ;;  %1015 = vmatprep.mubr.msk.f32.mxu1 %vm1481_vm0, %v1482_v1  ;;  %v1092_v8 = vpack.c.bf16 %v492_v6, %v491_v5  ;;  %v494_v9 = vld [vmem:[#allocation7 + $0x18] sm:$0xff]  ;;  %v406_v10 = vld [vmem:[%s355_s21] sm:$0xff]  ;;  %v497_v15 = vld [vmem:[#allocation7 + $0x30] sm:$0xff]  ;;  %s405_s13 = scalar_lea.vmem [#allocation11], %s907_s18  ;;  %s1906_s17 = sld [smem:[#allocation17_spill]] }
  0xa2   : > { %1090 = vmatpush3.bf16.msra.mxu0 %v1089_v4  ;;  %v1095_v11 = vpack.c.bf16 %v494_v9, %v493_v7  ;;  %v495_v12 = vld [vmem:[#allocation7 + $0x20] sm:$0xff]  ;;  %v496_v13 = vld [vmem:[#allocation7 + $0x28] sm:$0xff]  ;;  %v498_v16 = vld [vmem:[#allocation7 + $0x38] sm:$0xff]  ;;  %s789_s26 = sshll.u32 %s405_s13, 4  ;;  %s776_s19 = scalar_lea.sflag [#allocation4], %s1762_s1  ;;  %s1833_s26 = int_to_ptr.vmem [resolvable:$true] %s789_s26 }
  0xa3   : > { %1093 = vmatpush3.bf16.msra.mxu1 %v1092_v8  ;;  %1115 = vmatprep.subr.bf16.mxu0 %v1480_v0  ;;  %v1098_v14 = vpack.c.bf16 %v496_v13, %v495_v12  ;;  %v1101_v17 = vpack.c.bf16 %v498_v16, %v497_v15  ;;  %v499_v18 = vld [vmem:[#allocation7 + $0x40] sm:$0xff]  ;;  %v500_v19 = vld [vmem:[#allocation7 + $0x48] sm:$0xff]  ;;  %v501_v21 = vld [vmem:[#allocation7 + $0x50] sm:$0xff]  ;;  %s1397_s22 = scalar_lea.vmem %s1833_s26, 128  ;;  %p1907_p5 = scmp.ne.s32.totalorder %s1898_s23, 0 }
  0xa4   : > { %1094 = vmatprep.subr.bf16.mxu1 %v1480_v0  ;;  %v1104_v20 = vpack.c.bf16 %v500_v19, %v499_v18  ;;  %v502_v22 = vld [vmem:[#allocation7 + $0x58] sm:$0xff]  ;;  %v503_v24 = vld [vmem:[#allocation7 + $0x60] sm:$0xff]  ;;  %v504_v25 = vld [vmem:[#allocation7 + $0x68] sm:$0xff]  ;;  %p1398_p6 = scmp.ne.s32.totalorder %s1833_s26, %s1397_s22  ;;  %s1483_s15 = smov [#allocation11]  }
  0xa5   : > { %981 = vmatmul.mubr.msk.f32.vlgmr.msra.gmra.mrb[0].mxu0 %vm416_vm1, %v406_v10  ;;  %v1107_v23 = vpack.c.bf16 %v502_v22, %v501_v21  ;;  %v1110_v26 = vpack.c.bf16 %v504_v25, %v503_v24  ;;  %v505_v27 = vld [vmem:[#allocation7 + $0x70] sm:$0xff]  ;;  %v506_v28 = vld [vmem:[#allocation7 + $0x78] sm:$0xff]  ;;  %v586_v30 = vld [vmem:[#allocation8] sm:$0xff]  ;;  %s1401_s18 = sshll.u32 %s1483_s15, 4  ;;  %s1402_s18 = int_to_ptr.vmem [resolvable:$false] %s1401_s18 }
  0xa6   : > { %1050 = vmatprep.mubr.msk.f32.mxu0 %vm1481_vm0, %v1482_v1  ;;  %v1113_v29 = vpack.c.bf16 %v506_v28, %v505_v27  ;;  %v587_v31 = vld [vmem:[#allocation8 + $0x8] sm:$0xff]  ;;  %v588_v32 = vld [vmem:[#allocation8 + $0x10] sm:$0xff]  ;;  %v589_v34 = vld [vmem:[#allocation8 + $0x18] sm:$0xff]  ;;  %p1399_p7 = pnand %p1398_p6, %p1907_p5  ;;  %s1403_s24 = scalar_lea.vmem %s1402_s18, 256 }
  0xa7   : > { %1096 = vmatpush3.bf16.msra.mxu1 %v1095_v11  ;;  %v1116_v33 = vpack.c.bf16 %v587_v31, %v586_v30  ;;  %v1119_v35 = vpack.c.bf16 %v589_v34, %v588_v32  ;;  %v590_v36 = vld [vmem:[#allocation8 + $0x20] sm:$0xff]  ;;  %v591_v37 = vld [vmem:[#allocation8 + $0x28] sm:$0xff]  ;;  %v592_v39 = vld [vmem:[#allocation8 + $0x30] sm:$0xff]  ;;  %s1831_s14 = scalar_lea.hbm %s1906_s17, %s919_s29  ;;  %p1404_p12 = scmp.lt.s32.totalorder %s1833_s26, %s1402_s18 }
  0xa8   : > { %1097 = vmatprep.subr.bf16.mxu1 %v1480_v0  ;;  %v1122_v38 = vpack.c.bf16 %v591_v37, %v590_v36  ;;  %v593_v40 = vld [vmem:[#allocation8 + $0x38] sm:$0xff]  ;;  %v594_v42 = vld [vmem:[#allocation8 + $0x40] sm:$0xff]  ;;  %v595_v43 = vld [vmem:[#allocation8 + $0x48] sm:$0xff]  ;;  %p1400_p9 = pneg %p1399_p7  ;;  %p1405_p3 = scmp.lt.s32.totalorder %s1403_s24, %s1397_s22 }
  0xa9   : > { %1117 = vmatpush3.bf16.msra.mxu0 %v1116_v33  ;;  %v1125_v41 = vpack.c.bf16 %v593_v40, %v592_v39  ;;  %v1128_v44 = vpack.c.bf16 %v595_v43, %v594_v42  ;;  %v596_v45 = vld [vmem:[#allocation8 + $0x50] sm:$0xff]  ;;  %v597_v46 = vld [vmem:[#allocation8 + $0x58] sm:$0xff]  ;;  %v913_v48 = vld [vmem:[%s1877_s2] ss:$0 sm:$0xff] }
  0xaa   : > { %1118 = vmatprep.subr.bf16.mxu0 %v1480_v0  ;;  %v1131_v47 = vpack.c.bf16 %v597_v46, %v596_v45  ;;  %v598_v53 = vld [vmem:[#allocation8 + $0x60] sm:$0xff]  ;;  %v599_v54 = vld [vmem:[#allocation8 + $0x68] sm:$0xff]  ;;  %v600_v56 = vld [vmem:[#allocation8 + $0x70] sm:$0xff]  ;;  %p1406_p13 = por %p1405_p3, %p1404_p12 }
  0xab   : > { %1099 = vmatpush3.bf16.msra.mxu1 %v1098_v14  ;;  %v1134_v55 = vpack.c.bf16 %v599_v54, %v598_v53  ;;  %v601_v57 = vld [vmem:[#allocation8 + $0x78] sm:$0xff]  ;;  %v681_v59 = vld [vmem:[#allocation10] sm:$0xff]  ;;  %v682_v60 = vld [vmem:[#allocation10 + $0x8] sm:$0xff] }
  0xac   : > { %1100 = vmatprep.subr.bf16.mxu1 %v1480_v0  ;;  %v1137_v58 = vpack.c.bf16 %v601_v57, %v600_v56  ;;  %v683_v61 = vld [vmem:[#allocation10 + $0x10] sm:$0xff]  ;;  %v1140_v62 = vpack.c.bf16 %v682_v60, %v681_v59  ;;  %v684_v63 = vld [vmem:[#allocation10 + $0x18] sm:$0xff]  ;;  %v686_v3 = vld [vmem:[#allocation10 + $0x28] sm:$0xff]  ;;  %p1407_p0 = pnand %p1406_p13, %p1400_p9 }
  0xad   : > { %1120 = vmatpush3.bf16.msra.mxu0 %v1119_v35  ;;  %v1143_v2 = vpack.c.bf16 %v684_v63, %v683_v61  ;;  %v687_v5 = vld [vmem:[#allocation10 + $0x30] sm:$0xff]  ;;  %v688_v6 = vld [vmem:[#allocation10 + $0x38] sm:$0xff]  ;;  %v689_v8 = vld [vmem:[#allocation10 + $0x40] sm:$0xff] }
  0xae   : > { %1121 = vmatprep.subr.bf16.mxu0 %v1480_v0  ;;  %v1149_v7 = vpack.c.bf16 %v688_v6, %v687_v5  ;;  %v690_v9 = vld [vmem:[#allocation10 + $0x48] sm:$0xff]  ;;  %v691_v11 = vld [vmem:[#allocation10 + $0x50] sm:$0xff]  ;;  %v692_v12 = vld [vmem:[#allocation10 + $0x58] sm:$0xff] }
  0xaf   : > { %1102 = vmatpush3.bf16.msra.mxu1 %v1101_v17  ;;  %v1152_v10 = vpack.c.bf16 %v690_v9, %v689_v8  ;;  %v1155_v13 = vpack.c.bf16 %v692_v12, %v691_v11  ;;  %v915_v14 = vld [vmem:[%s1879_s4] ss:$0 sm:$0xff]  ;;  %v694_v21 = vld [vmem:[#allocation10 + $0x68] sm:$0xff]  ;;  %v696_v24 = vld [vmem:[#allocation10 + $0x78] sm:$0xff] }
  0xb0   : > { %1103 = vmatprep.subr.bf16.mxu1 %v1480_v0 }
  0xb1   : > { %1123 = vmatpush3.bf16.msra.mxu0 %v1122_v38 }
  0xb2   : > { %1124 = vmatprep.subr.bf16.mxu0 %v1480_v0 }
  0xb3   : > { %1105 = vmatpush3.bf16.msra.mxu1 %v1104_v20  ;;  %v693_v20 = vld [vmem:[#allocation10 + $0x60] sm:$0xff] }
  0xb4   : > { %1106 = vmatprep.subr.bf16.mxu1 %v1480_v0  ;;  %v1158_v22 = vpack.c.bf16 %v694_v21, %v693_v20 }
  0xb5   : > { %1126 = vmatpush3.bf16.msra.mxu0 %v1125_v41 }
  0xb6   : > { %1127 = vmatprep.subr.bf16.mxu0 %v1480_v0 }
  0xb7   : > { %1108 = vmatpush3.bf16.msra.mxu1 %v1107_v23  ;;  %v695_v23 = vld [vmem:[#allocation10 + $0x70] sm:$0xff] }
  0xb8   : > { %1109 = vmatprep.subr.bf16.mxu1 %v1480_v0  ;;  %v1161_v25 = vpack.c.bf16 %v696_v24, %v695_v23 }
  0xb9   : > { %1129 = vmatpush3.bf16.msra.mxu0 %v1128_v44 }
  0xba   : > { %1130 = vmatprep.subr.bf16.mxu0 %v1480_v0 }
  0xbb   : > { %1111 = vmatpush3.bf16.msra.mxu1 %v1110_v26  ;;  %v916_v26 = vld [vmem:[%s1881_s6] ss:$0 sm:$0xff] }
  0xbc   : > { %1112 = vmatprep.subr.bf16.mxu1 %v1480_v0 }
  0xbd   : > { %1132 = vmatpush3.bf16.msra.mxu0 %v1131_v47 }
  0xbe   : > { %1133 = vmatprep.subr.bf16.mxu0 %v1480_v0 }
  0xbf   : > { %1114 = vmatpush3.bf16.msra.mxu1 %v1113_v29 }
  0xc0   : > { %1139 = vmatprep.subr.bf16.mxu1 %v1480_v0 }
  0xc1   : > { %1135 = vmatpush3.bf16.msra.mxu0 %v1134_v55 }
  0xc2   : > { %1136 = vmatprep.subr.bf16.mxu0 %v1480_v0 }
  0xc5   : > { %1138 = vmatpush3.bf16.msra.mxu0 %v1137_v58 }
 0x178   : > { %v486_v49 = vpop.f32.mrb[0].mxu0 }
 0x179   : > { %v487_v50 = vadd.f32 %v913_v48, %v486_v49  ;;  %v982_v51 = vpop.f32.mrb[1].mxu0 }
 0x17b   : > { %v490_v52 = vmax.f32 %v487_v50, 0.0 }
 0x17d   : > { %1016 = vmatmul.mubr.f32.vlgmr.msra.gmra.mrb[0].mxu1 %v490_v52 }
 0x17e   : > { %1085 = vmatprep.mubr.msk.f32.mxu1 %vm1481_vm0, %v1482_v1  ;;  %1141 = vmatpush3.bf16.msra.mxu1 %v1140_v62  ;;  %v685_v1 = vld [vmem:[#allocation10 + $0x20] sm:$0xff] }
 0x17f   : > { %1142 = vmatprep.subr.bf16.mxu1 %v1480_v0  ;;  %v1146_v4 = vpack.c.bf16 %v686_v3, %v685_v1 }
 0x182   : > { %1144 = vmatpush3.bf16.msra.mxu1 %v1143_v2 }
 0x183   : > { %1145 = vmatprep.subr.bf16.mxu1 %v1480_v0 }
 0x186   : > { %1147 = vmatpush3.bf16.msra.mxu1 %v1146_v4 }
 0x187   : > { %1148 = vmatprep.subr.bf16.mxu1 %v1480_v0 }
 0x18a   : > { %1150 = vmatpush3.bf16.msra.mxu1 %v1149_v7 }
 0x18b   : > { %1151 = vmatprep.subr.bf16.mxu1 %v1480_v0 }
 0x18e   : > { %1153 = vmatpush3.bf16.msra.mxu1 %v1152_v10 }
 0x18f   : > { %1154 = vmatprep.subr.bf16.mxu1 %v1480_v0 }
 0x192   : > { %1156 = vmatpush3.bf16.msra.mxu1 %v1155_v13 }
 0x193   : > { %1157 = vmatprep.subr.bf16.mxu1 %v1480_v0 }
 0x196   : > { %1159 = vmatpush3.bf16.msra.mxu1 %v1158_v22 }
 0x197   : > { %1160 = vmatprep.subr.bf16.mxu1 %v1480_v0  ;;  %v917_v0 = vld [vmem:[%s1883_s8] ss:$0 sm:$0xff] }
 0x19a   : > { %1162 = vmatpush3.bf16.msra.mxu1 %v1161_v25 }
 0x250   : > { %v580_v15 = vpop.f32.mrb[0].mxu1 }
 0x251   : > { %v581_v16 = vadd.f32 %v915_v14, %v580_v15  ;;  %v1017_v17 = vpop.f32.mrb[1].mxu1 }
 0x253   : > { %v584_v18 = vmax.f32 %v581_v16, 0.0 }
 0x255   : > { %v585_v19 = vadd.f32 %v584_v18, %v490_v52 }
 0x257   : > { %1051 = vmatmul.mubr.f32.vlgmr.msra.gmra.mrb[2].mxu0 %v585_v19 }
 0x32a   : > { %v675_v27 = vpop.f32.mrb[2].mxu0 }
 0x32b   : > { %v676_v28 = vadd.f32 %v916_v26, %v675_v27  ;;  %v1052_v29 = vpop.f32.mrb[3].mxu0 }
 0x32d   : > { %v679_v30 = vmax.f32 %v676_v28, 0.0 }
 0x32f   : > { %v680_v31 = vadd.f32 %v679_v30, %v585_v19 }
 0x331   : > { %1086 = vmatmul.mubr.f32.vlgmr.msra.gmra.mrb[2].mxu1 %v680_v31 }
 0x404   : > { %v770_v32 = vpop.f32.mrb[2].mxu1 }
 0x405   : > { %v771_v33 = vadd.f32 %v917_v0, %v770_v32  ;;  %v1087_v34 = vpop.f32.mrb[3].mxu1 }
 0x407   : > { %774 = vst [vmem:[%s405_s13] sm:$0xff] %v771_v33 }
 0x408   : > { %1410 = shalt.err (!%p1407_p0)
}
 0x409   : > { %s1411_s1 = scalar_lea.hbm %s1831_s14, 128  ;;  %s1415_s29 = scalar_lea.hbm %s1906_s17, 256 }
 0x40a   : > { %p1412_p2 = scmp.ne.s32.totalorder %s1831_s14, %s1411_s1  ;;  %p1416_p10 = scmp.lt.u32.totalorder %s1831_s14, %s1906_s17 }
 0x40b   : > { %p1417_p11 = scmp.lt.u32.totalorder %s1415_s29, %s1411_s1  ;;  %p1419_p6 = scmp.lt.u32.totalorder %s1411_s1, %s1831_s14 }
 0x40c   : > { %p1413_p8 = pnand %p1412_p2, %p1907_p5 }
 0x40d   : > { %p1418_p1 = por %p1417_p11, %p1416_p10 }
 0x40e   : > { %p1414_p4 = pneg %p1413_p8 }
 0x40f   : > { %p1420_p7 = por %p1419_p6, %p1418_p1 }
 0x411   : > { %p1421_p9 = pnand %p1420_p7, %p1414_p4 }
 0x413   : > { %1424 = shalt.err (!%p1421_p9)
}
 0x414   : > { %1181 = dma.vmem_to_hbm [thread:$0]  (%p1907_p5), %s1833_s26, 128, %s1831_s14, %s776_s19  }
 0x415 PF: > { %s801_s16 = sand.u32 1, %s1459_s30   ;;  %p1908_p12 = scmp.ne.s32.totalorder %s1899_s28, 0 }
 0x416   : > { %p1909_p3 = scmp.ge.s32.totalorder %s1471_s12, 2  ;;  %s802_s22 = scalar_lea.sflag [#allocation4], %s801_s16 }
 0x418   : > { %p1201_p13 = pnand %p1909_p3, %p1908_p12 }
 0x41a   : > { %1454 = dma.done.wait (!%p1201_p13), %s802_s22, 128  }
 0x41b   : > { %1456 = vsyncadd (!%p1201_p13), %s802_s22, 4294967168  ;;  %p24_p0 = scmp.ge.s32.totalorder %s1686_s27, 4   ;;  %s1910_s30 = smov %s1463_s10 }
 0x41c   : > { %s1911_s10 = smov %s1467_s11  ;;  %s1912_s11 = smov %s1697_s25 }
 0x41d   : > { %s1913_s12 = smov %s1686_s27  ;;  %26 = sbr.rel (!%p24_p0) target bundleno = 10 (0xa), region = 117 }
 0x424   :  { %807 = vsyncpa [#allocation3], 1 }
 0x425   :  { %809 = vsyncpa [#allocation3 + $0x1], 1 }
 0x426   :  { %810 = vsyncpa [#allocation6], 1 }
 0x427   :  { %811 = vsyncpa [#allocation9], 1 }
 0x428   :  { %812 = vsyncpa [#allocation4], 1 }
 0x429   :  { %814 = vsyncpa [#allocation4 + $0x1], 1 }

</bundles_post_ra>
